<compile_context>
chip_gen: v6e
topology: v6e:2x2x1
jax: 0.10.0
libtpu: 0.0.40
codegen_flags: <defaults>
</compile_context>

<pallas_src>
import functools
import math

import jax
import jax.numpy as jnp
from jax.experimental import pallas as pl
from jax.experimental.pallas import tpu as pltpu


def _round_up(x, m):
    return ((x + m - 1) // m) * m


# ----------------------------- Pallas kernels -------------------------------

def _linear_kernel(x_ref, w_ref, b_ref, o_ref, *, relu):
    # y = x @ W + b   (W stored as [in, out] == torch Linear weight.T)
    y = jnp.dot(x_ref[...], w_ref[...], preferred_element_type=jnp.float32)
    y = y + b_ref[...]
    if relu:
        y = jnp.maximum(y, 0.0)
    o_ref[...] = y.astype(o_ref.dtype)


def linear(x, w, b, *, relu=False, row_tile=128):
    n, d_in = x.shape
    d_out = w.shape[1]
    tr = min(row_tile, n)
    assert n % tr == 0
    x16 = x.astype(jnp.bfloat16)
    w16 = w.astype(jnp.bfloat16)
    return pl.pallas_call(
        functools.partial(_linear_kernel, relu=relu),
        out_shape=jax.ShapeDtypeStruct((n, d_out), jnp.float32),
        grid_spec=pltpu.PrefetchScalarGridSpec(
            num_scalar_prefetch=0,
            grid=(n // tr,),
            in_specs=[
                pl.BlockSpec((tr, d_in), lambda i: (i, 0)),
                pl.BlockSpec((d_in, d_out), lambda i: (0, 0)),
                pl.BlockSpec((1, d_out), lambda i: (0, 0)),
            ],
            out_specs=pl.BlockSpec((tr, d_out), lambda i: (i, 0)),
        ),
        compiler_params=pltpu.CompilerParams(
            dimension_semantics=("parallel",)),
    )(x16, w16, b.reshape(1, -1).astype(jnp.float32))


def _gate_reduce(e, y_all, num_k, hidden):
    # sum_k e[:, k] * y_all[:, k*H:(k+1)*H]  -- static 128-aligned lane slices,
    # one lane-broadcast of e per expert (hoisted: done exactly K times).
    out = e[:, 0:1] * y_all[:, :hidden]
    for k in range(1, num_k):
        out = out + e[:, k:k + 1] * y_all[:, k * hidden:(k + 1) * hidden]
    return out


def _canet_layer_kernel(a_ref, hc_ref, hr_ref, wenv_ref, benv_ref,
                        wg_ref, ws_ref, o32_ref, o16_ref,
                        acc_ref, e_ref, self_ref, *, num_k, hidden):
    # One CaNet layer (inference):
    #   e      = softmax(h @ W_env + b_env)                         [TR, K]
    #   hi_g   = A_norm @ h     (accumulated over grid axis j)      [TR, Hp]
    #   out    = sum_k e[:,k] * (hi_g @ Wg_k + h @ Ws_k) + h        (residual)
    #   h_new  = ReLU(out)
    j = pl.program_id(1)
    last = pl.num_programs(1) - 1

    # -- prologue (once per row tile): gate + hi_g-independent expert half ----
    @pl.when(j == 0)
    def _():
        acc_ref[...] = jnp.zeros_like(acc_ref)
        h = hr_ref[...]                                            # [TR, Hp] f32

        logit = jnp.dot(h, wenv_ref[...],
                        preferred_element_type=jnp.float32) + benv_ref[...]
        logit = logit - jnp.max(logit, axis=-1, keepdims=True)
        p = jnp.exp(logit)
        e = p * pl.reciprocal(jnp.sum(p, axis=-1, keepdims=True), approx=True)
        e_ref[...] = e

        # self half of the expert matmuls, gate-reduced over K.
        s_all = jnp.dot(h.astype(jnp.bfloat16), ws_ref[...],
                        preferred_element_type=jnp.float32)        # [TR, K*Hp]
        self_ref[...] = _gate_reduce(e, s_all, num_k, hidden)

    # -- A @ h contraction: bf16 x bf16 -> f32 accumulate on the MXU ----------
    acc_ref[...] += jnp.dot(a_ref[...], hc_ref[...],
                            preferred_element_type=jnp.float32)

    # -- epilogue (once per row tile) ------------------------------------------
    @pl.when(j == last)
    def _():
        g_all = jnp.dot(acc_ref[...].astype(jnp.bfloat16), wg_ref[...],
                        preferred_element_type=jnp.float32)        # [TR, K*Hp]
        gated = _gate_reduce(e_ref[...], g_all, num_k, hidden) + self_ref[...]
        h_new = jnp.maximum(gated + hr_ref[...], 0.0)
        o32_ref[...] = h_new
        o16_ref[...] = h_new.astype(jnp.bfloat16)


def canet_layer(h32, h16, a_norm, w_env, b_env, w_g, w_s, *, tr, tc):
    n_pad, h_pad = h32.shape
    k = w_env.shape[1]
    assert n_pad % tr == 0 and n_pad % tc == 0
    grid = (n_pad // tr, n_pad // tc)

    # Advisory cost model so XLA schedules neighbouring ops around the kernel.
    flops = (2 * n_pad * n_pad * h_pad                 # A @ h
             + 2 * 2 * n_pad * h_pad * k * h_pad       # the two expert matmuls
             + 2 * n_pad * h_pad * k)                  # env gate
    bytes_accessed = (n_pad * n_pad * 2                # A bf16
                      + n_pad * h_pad * 2              # h contraction bf16
                      + n_pad * h_pad * 4              # h rows f32
                      + 2 * h_pad * k * h_pad * 2      # W_g + W_s bf16
                      + h_pad * k * 4 + k * 4          # env params
                      + n_pad * h_pad * (4 + 2))       # f32 + bf16 outputs
    cost = pl.CostEstimate(flops=int(flops), transcendentals=int(n_pad * k),
                           bytes_accessed=int(bytes_accessed))

    # Explicit VMEM budget only when the blocks get big (default otherwise).
    est = (2 * tr * tc * 2 + 2 * tc * h_pad * 2 + 2 * tr * h_pad * 4
           + 2 * tr * h_pad * (4 + 2)
           + 2 * (2 * h_pad * k * h_pad * 2 + h_pad * k * 4 + k * 4)
           + tr * h_pad * 8 + tr * 128 * 4 + (2 << 20))
    vmem_limit = None if est <= (32 << 20) else min(int(est), 64 << 20)

    return pl.pallas_call(
        functools.partial(_canet_layer_kernel, num_k=k, hidden=h_pad),
        out_shape=(jax.ShapeDtypeStruct((n_pad, h_pad), jnp.float32),
                   jax.ShapeDtypeStruct((n_pad, h_pad), jnp.bfloat16)),
        grid_spec=pltpu.PrefetchScalarGridSpec(
            num_scalar_prefetch=0,
            grid=grid,
            in_specs=[
                pl.BlockSpec((tr, tc), lambda i, j: (i, j)),            # A_norm (bf16)
                pl.BlockSpec((tc, h_pad), lambda i, j: (j, 0)),         # h contraction (bf16)
                pl.BlockSpec((tr, h_pad), lambda i, j: (i, 0)),         # h rows (f32)
                pl.BlockSpec((h_pad, k), lambda i, j: (0, 0)),          # W_env
                pl.BlockSpec((1, k), lambda i, j: (0, 0)),              # b_env
                pl.BlockSpec((h_pad, k * h_pad), lambda i, j: (0, 0)),  # W_g (bf16)
                pl.BlockSpec((h_pad, k * h_pad), lambda i, j: (0, 0)),  # W_s (bf16)
            ],
            out_specs=[pl.BlockSpec((tr, h_pad), lambda i, j: (i, 0)),
                       pl.BlockSpec((tr, h_pad), lambda i, j: (i, 0))],
            scratch_shapes=[pltpu.VMEM((tr, h_pad), jnp.float32),   # hi_g accumulator
                            pltpu.VMEM((tr, k), jnp.float32),       # gate e
                            pltpu.VMEM((tr, h_pad), jnp.float32)],  # gated self half
        ),
        compiler_params=pltpu.CompilerParams(
            dimension_semantics=("parallel", "arbitrary"),
            vmem_limit_bytes=vmem_limit),
        cost_estimate=cost,
    )(a_norm, h16, h32, w_env, b_env.reshape(1, -1), w_g, w_s)


# ------------------------------- JAX glue ------------------------------------

def build_norm_adj(edge_index, n, n_pad):
    # Mirrors gcn_conv(): d = degree(col, N); value = 1/sqrt(d[col]*d[row]);
    # SparseTensor(row=col, col=row, value) @ x  ==  A @ x with
    # A[col_e, row_e] += value_e. No self-loops (matches the reference).
    row, col = edge_index[0], edge_index[1]
    deg = jnp.zeros((n,), jnp.float32).at[col].add(1.0)
    d_in = jnp.sqrt(1.0 / deg[col])
    d_out = jnp.sqrt(1.0 / deg[row])
    val = jnp.nan_to_num(d_in * d_out, nan=0.0, posinf=0.0, neginf=0.0)
    a = jnp.zeros((n_pad, n_pad), jnp.float32).at[col, row].add(val)
    return a.astype(jnp.bfloat16)


def _pad2(x, r, c):
    return jnp.pad(x, ((0, r - x.shape[0]), (0, c - x.shape[1])))


def _pack_expert_weights(conv_w, h_pad):
    # conv_w [K, 2H, H] -> (W_g, W_s) each [Hp, K*Hp] bf16, zero-padded so the
    # per-expert output blocks are 128-lane aligned.
    k, two_h, h = conv_w.shape
    h_in = two_h // 2
    wg = jnp.zeros((h_pad, k, h_pad), jnp.float32)
    ws = jnp.zeros((h_pad, k, h_pad), jnp.float32)
    wg = wg.at[:h_in, :, :h].set(jnp.transpose(conv_w[:, :h_in, :], (1, 0, 2)))
    ws = ws.at[:h_in, :, :h].set(jnp.transpose(conv_w[:, h_in:, :], (1, 0, 2)))
    return (wg.reshape(h_pad, k * h_pad).astype(jnp.bfloat16),
            ws.reshape(h_pad, k * h_pad).astype(jnp.bfloat16))


def _pick_tiles(n):
    # Row tile <= 128 (epilogue vreg pressure); >= 2 row tiles when possible
    # (v7x megacore); contraction tile = full node dim when it fits (h fetched
    # once), else 1024-wide tiles (cuts per-step overhead vs 256).
    n16 = _round_up(max(n, 16), 16)
    if n16 >= 256:
        tr = 128
    else:
        tr = max(16, _round_up(n16 // 2, 16))
    n_pad = _round_up(n16, tr)
    if n_pad // tr < 2:
        n_pad = 2 * tr
    if n_pad <= 2048:
        tc = n_pad
    else:
        tc = 1024
        n_pad = _round_up(n_pad, tc)
    return tr, tc, n_pad


def canet_forward(x, edge_index, params):
    # training=False -> dropout identity, gating uses plain softmax.
    n, d = x.shape
    hidden = params['fc0_b'].shape[0]
    c = params['fc1_b'].shape[0]

    h_pad = _round_up(hidden, 128)
    c_pad = _round_up(c, 128)
    d_pad = _round_up(d, 128) if d >= 128 else _round_up(d, 16)
    tr, tc, n_pad = _pick_tiles(n)

    # lane-dense, zero-padded parameters / inputs (padding is value-preserving)
    x_p = _pad2(x, n_pad, d_pad)
    fc0_w = _pad2(params['fc0_w'], d_pad, h_pad)
    fc0_b = jnp.pad(params['fc0_b'], (0, h_pad - hidden))
    fc1_w = _pad2(params['fc1_w'], h_pad, c_pad)
    fc1_b = jnp.pad(params['fc1_b'], (0, c_pad - c))

    a_norm = build_norm_adj(edge_index, n, n_pad)

    h32 = linear(x_p, fc0_w, fc0_b, relu=True, row_tile=tr)       # fcs[0] + ReLU
    h16 = h32.astype(jnp.bfloat16)
    for lp in params['layers']:
        w_env = _pad2(lp['env_w'], h_pad, lp['env_w'].shape[1])
        w_g, w_s = _pack_expert_weights(lp['conv_w'], h_pad)
        h32, h16 = canet_layer(h32, h16, a_norm, w_env, lp['env_b'],
                               w_g, w_s, tr=tr, tc=tc)
    out = linear(h16, fc1_w, fc1_b, relu=False, row_tile=tr)      # fcs[-1]
    return out[:n, :c]


def init_params(key, d, hidden, c, K, num_layers):
    keys = jax.random.split(key, 2 + 2 * num_layers)

    def lin_init(k, fan_in, fan_out):
        bound = 1.0 / math.sqrt(fan_in)
        kw, kb = jax.random.split(k)
        w = jax.random.uniform(kw, (fan_in, fan_out), jnp.float32, -bound, bound)
        b = jax.random.uniform(kb, (fan_out,), jnp.float32, -bound, bound)
        return w, b

    fc0_w, fc0_b = lin_init(keys[0], d, hidden)
    fc1_w, fc1_b = lin_init(keys[1], hidden, c)
    layers = []
    stdv = 1.0 / math.sqrt(hidden)            # CaNetConv.reset_parameters
    for i in range(num_layers):
        env_w, env_b = lin_init(keys[2 + 2 * i], hidden, K)
        conv_w = jax.random.uniform(keys[3 + 2 * i], (K, 2 * hidden, hidden),
                                    jnp.float32, -stdv, stdv)
        layers.append(dict(env_w=env_w, env_b=env_b, conv_w=conv_w))
    return dict(fc0_w=fc0_w, fc0_b=fc0_b, fc1_w=fc1_w, fc1_b=fc1_b, layers=layers)


# --------------------------------- main ---------------------------------------

if __name__ == "__main__":
    # small, forward-consistent shapes
    N, D, HIDDEN, K, C, NUM_LAYERS, E = 16, 8, 32, 4, 3, 2, 40

    key = jax.random.PRNGKey(0)
    kx, kadj, kparam = jax.random.split(key, 3)

    x = jax.random.normal(kx, (N, D), jnp.float32)            # node features
    edge_index = jax.random.randint(kadj, (2, E), 0, N)       # [2, E] COO edges

    params = init_params(kparam, D, HIDDEN, C, K, NUM_LAYERS)

    fwd = jax.jit(canet_forward)
    out = fwd(x, edge_index, params)                          # [N, C]
    jax.block_until_ready(out)
    assert out.shape == (N, C)
    print("KERNEL_OK")
</pallas_src>

<mosaic_0001>
module attributes {stable_mosaic.version = 11 : i64} {
  func.func private @main(%arg0: i32) attributes {dimension_semantics = [#tpu.dimension_semantics<core_parallel>], iteration_bounds = array<i64: 2>, tpu.core_type = #tpu.core_type<sc_scalar_subcore>, window_params = []} {
    return
  }
}

module attributes {stable_mosaic.version = 11 : i64} {
  func.func private @main(%arg0: i32) attributes {dimension_semantics = [#tpu.dimension_semantics<core_parallel>], iteration_bounds = array<i64: 2>, tpu.core_type = #tpu.core_type<sc_scalar_subcore>, window_params = []} {
    return
  }
}

module attributes {stable_mosaic.version = 11 : i64} {
  func.func @_linear_kernel(%arg0: i32, %arg1: memref<16x16xbf16, #tpu.memory_space<vmem>>, %arg2: memref<16x128xbf16, #tpu.memory_space<vmem>>, %arg3: memref<1x128xf32, #tpu.memory_space<vmem>>, %arg4: memref<16x128xf32, #tpu.memory_space<vmem>>) attributes {dimension_semantics = [#tpu.dimension_semantics<parallel>], iteration_bounds = array<i64: 2>, scalar_prefetch = 0 : i64, scratch_operands = 0 : i64, tpu.core_type = #tpu.core_type<tc>, window_params = [{transform_indices = @transform_0, window_bounds = array<i64: 16, 16>}, {pipeline_mode = #tpu.pipeline_mode<synchronous>, transform_indices = @transform_1, window_bounds = array<i64: 16, 128>}, {pipeline_mode = #tpu.pipeline_mode<synchronous>, transform_indices = @transform_2, window_bounds = array<i64: 1, 128>}, {transform_indices = @transform_3, window_bounds = array<i64: 16, 128>}]} {
    %c0 = arith.constant 0 : index
    %c0_0 = arith.constant 0 : index
    %0 = vector.load %arg1[%c0, %c0_0] : memref<16x16xbf16, #tpu.memory_space<vmem>>, vector<16x16xbf16>
    %c0_1 = arith.constant 0 : index
    %c0_2 = arith.constant 0 : index
    %1 = vector.load %arg2[%c0_1, %c0_2] : memref<16x128xbf16, #tpu.memory_space<vmem>>, vector<16x128xbf16>
    %cst = arith.constant dense<0.000000e+00> : vector<16x128xf32>
    %2 = tpu.matmul %0, %1, %cst {dimension_numbers = #tpu.dot_dimension_numbers<[1], [0], [0], [1], [0, 0, 1, 1], [], []>} : vector<16x16xbf16>, vector<16x128xbf16>, vector<16x128xf32> -> vector<16x128xf32>
    %c0_3 = arith.constant 0 : index
    %c0_4 = arith.constant 0 : index
    %3 = vector.load %arg3[%c0_3, %c0_4] : memref<1x128xf32, #tpu.memory_space<vmem>>, vector<1x128xf32>
    %4 = vector.broadcast %3 : vector<1x128xf32> to vector<16x128xf32>
    %5 = arith.addf %2, %4 : vector<16x128xf32>
    %cst_5 = arith.constant 0.000000e+00 : f32
    %6 = vector.broadcast %cst_5 : f32 to vector<16x128xf32>
    %7 = arith.maximumf %5, %6 : vector<16x128xf32>
    %c0_6 = arith.constant 0 : index
    %c0_7 = arith.constant 0 : index
    %8 = vector.load %arg4[%c0_6, %c0_7] : memref<16x128xf32, #tpu.memory_space<vmem>>, vector<16x128xf32>
    tpu.vector_store %arg4[%c0_6, %c0_7], %7 {strides = array<i32>} : memref<16x128xf32, #tpu.memory_space<vmem>>, vector<16x128xf32>,
    return
  }
  func.func @transform_0(%arg0: i32) -> (i32, i32) {
    %c0_i32 = arith.constant 0 : i32
    %c0_i32_0 = arith.constant 0 : i32
    return %arg0, %c0_i32 : i32, i32
  }
  func.func @transform_1(%arg0: i32) -> (i32, i32) {
    %c0_i32 = arith.constant 0 : i32
    %c0_i32_0 = arith.constant 0 : i32
    %c0_i32_1 = arith.constant 0 : i32
    return %c0_i32, %c0_i32_0 : i32, i32
  }
  func.func @transform_2(%arg0: i32) -> (i32, i32) {
    %c0_i32 = arith.constant 0 : i32
    %c0_i32_0 = arith.constant 0 : i32
    %c0_i32_1 = arith.constant 0 : i32
    return %c0_i32, %c0_i32_0 : i32, i32
  }
  func.func @transform_3(%arg0: i32) -> (i32, i32) {
    %c0_i32 = arith.constant 0 : i32
    %c0_i32_0 = arith.constant 0 : i32
    return %arg0, %c0_i32 : i32, i32
  }
}

module attributes {stable_mosaic.version = 11 : i64} {
  func.func @_linear_kernel(%arg0: i32, %arg1: memref<16x128xbf16, #tpu.memory_space<vmem>>, %arg2: memref<128x128xbf16, #tpu.memory_space<vmem>>, %arg3: memref<1x128xf32, #tpu.memory_space<vmem>>, %arg4: memref<16x128xf32, #tpu.memory_space<vmem>>) attributes {dimension_semantics = [#tpu.dimension_semantics<parallel>], iteration_bounds = array<i64: 2>, scalar_prefetch = 0 : i64, scratch_operands = 0 : i64, tpu.core_type = #tpu.core_type<tc>, window_params = [{transform_indices = @transform_0, window_bounds = array<i64: 16, 128>}, {pipeline_mode = #tpu.pipeline_mode<synchronous>, transform_indices = @transform_1, window_bounds = array<i64: 128, 128>}, {pipeline_mode = #tpu.pipeline_mode<synchronous>, transform_indices = @transform_2, window_bounds = array<i64: 1, 128>}, {transform_indices = @transform_3, window_bounds = array<i64: 16, 128>}]} {
    %c0 = arith.constant 0 : index
    %c0_0 = arith.constant 0 : index
    %0 = vector.load %arg1[%c0, %c0_0] : memref<16x128xbf16, #tpu.memory_space<vmem>>, vector<16x128xbf16>
    %c0_1 = arith.constant 0 : index
    %c0_2 = arith.constant 0 : index
    %1 = vector.load %arg2[%c0_1, %c0_2] : memref<128x128xbf16, #tpu.memory_space<vmem>>, vector<128x128xbf16>
    %cst = arith.constant dense<0.000000e+00> : vector<16x128xf32>
    %2 = tpu.matmul %0, %1, %cst {dimension_numbers = #tpu.dot_dimension_numbers<[1], [0], [0], [1], [0, 0, 1, 1], [], []>} : vector<16x128xbf16>, vector<128x128xbf16>, vector<16x128xf32> -> vector<16x128xf32>
    %c0_3 = arith.constant 0 : index
    %c0_4 = arith.constant 0 : index
    %3 = vector.load %arg3[%c0_3, %c0_4] : memref<1x128xf32, #tpu.memory_space<vmem>>, vector<1x128xf32>
    %4 = vector.broadcast %3 : vector<1x128xf32> to vector<16x128xf32>
    %5 = arith.addf %2, %4 : vector<16x128xf32>
    %c0_5 = arith.constant 0 : index
    %c0_6 = arith.constant 0 : index
    %6 = vector.load %arg4[%c0_5, %c0_6] : memref<16x128xf32, #tpu.memory_space<vmem>>, vector<16x128xf32>
    tpu.vector_store %arg4[%c0_5, %c0_6], %5 {strides = array<i32>} : memref<16x128xf32, #tpu.memory_space<vmem>>, vector<16x128xf32>,
    return
  }
  func.func @transform_0(%arg0: i32) -> (i32, i32) {
    %c0_i32 = arith.constant 0 : i32
    %c0_i32_0 = arith.constant 0 : i32
    return %arg0, %c0_i32 : i32, i32
  }
  func.func @transform_1(%arg0: i32) -> (i32, i32) {
    %c0_i32 = arith.constant 0 : i32
    %c0_i32_0 = arith.constant 0 : i32
    %c0_i32_1 = arith.constant 0 : i32
    return %c0_i32, %c0_i32_0 : i32, i32
  }
  func.func @transform_2(%arg0: i32) -> (i32, i32) {
    %c0_i32 = arith.constant 0 : i32
    %c0_i32_0 = arith.constant 0 : i32
    %c0_i32_1 = arith.constant 0 : i32
    return %c0_i32, %c0_i32_0 : i32, i32
  }
  func.func @transform_3(%arg0: i32) -> (i32, i32) {
    %c0_i32 = arith.constant 0 : i32
    %c0_i32_0 = arith.constant 0 : i32
    return %arg0, %c0_i32 : i32, i32
  }
}

module attributes {stable_mosaic.version = 11 : i64} {
  func.func @_canet_layer_kernel(%arg0: i32, %arg1: i32, %arg2: memref<16x32xbf16, #tpu.memory_space<vmem>>, %arg3: memref<32x128xbf16, #tpu.memory_space<vmem>>, %arg4: memref<16x128xf32, #tpu.memory_space<vmem>>, %arg5: memref<128x4xf32, #tpu.memory_space<vmem>>, %arg6: memref<1x4xf32, #tpu.memory_space<vmem>>, %arg7: memref<128x512xbf16, #tpu.memory_space<vmem>>, %arg8: memref<128x512xbf16, #tpu.memory_space<vmem>>, %arg9: memref<16x128xf32, #tpu.memory_space<vmem>>, %arg10: memref<16x128xbf16, #tpu.memory_space<vmem>>, %arg11: memref<16x128xf32, #tpu.memory_space<vmem>>, %arg12: memref<16x4xf32, #tpu.memory_space<vmem>>, %arg13: memref<16x128xf32, #tpu.memory_space<vmem>>) attributes {dimension_semantics = [#tpu.dimension_semantics<parallel>, #tpu.dimension_semantics<arbitrary>], iteration_bounds = array<i64: 2, 1>, scalar_prefetch = 0 : i64, scratch_operands = 3 : i64, tpu.core_type = #tpu.core_type<tc>, window_params = [{transform_indices = @transform_0, window_bounds = array<i64: 16, 32>}, {transform_indices = @transform_1, window_bounds = array<i64: 32, 128>}, {transform_indices = @transform_2, window_bounds = array<i64: 16, 128>}, {pipeline_mode = #tpu.pipeline_mode<synchronous>, transform_indices = @transform_3, window_bounds = array<i64: 128, 4>}, {pipeline_mode = #tpu.pipeline_mode<synchronous>, transform_indices = @transform_4, window_bounds = array<i64: 1, 4>}, {pipeline_mode = #tpu.pipeline_mode<synchronous>, transform_indices = @transform_5, window_bounds = array<i64: 128, 512>}, {pipeline_mode = #tpu.pipeline_mode<synchronous>, transform_indices = @transform_6, window_bounds = array<i64: 128, 512>}, {transform_indices = @transform_7, window_bounds = array<i64: 16, 128>}, {transform_indices = @transform_8, window_bounds = array<i64: 16, 128>}]} {
    %c0_i32 = arith.constant 0 : i32
    %0 = arith.cmpi eq, %arg1, %c0_i32 : i32
    %1 = arith.extui %0 : i1 to i32
    %c0_i32_0 = arith.constant 0 : i32
    %2 = arith.cmpi ne, %1, %c0_i32_0 : i32
    scf.if %2 {
      %cst_10 = arith.constant 0.000000e+00 : f32
      %12 = vector.broadcast %cst_10 : f32 to vector<16x128xf32>
      %c0_11 = arith.constant 0 : index
      %c0_12 = arith.constant 0 : index
      %13 = vector.load %arg11[%c0_11, %c0_12] : memref<16x128xf32, #tpu.memory_space<vmem>>, vector<16x128xf32>
      tpu.vector_store %arg11[%c0_11, %c0_12], %12 {strides = array<i32>} : memref<16x128xf32, #tpu.memory_space<vmem>>, vector<16x128xf32>,
      %c0_13 = arith.constant 0 : index
      %c0_14 = arith.constant 0 : index
      %14 = vector.load %arg4[%c0_13, %c0_14] : memref<16x128xf32, #tpu.memory_space<vmem>>, vector<16x128xf32>
      %c0_15 = arith.constant 0 : index
      %c0_16 = arith.constant 0 : index
      %15 = vector.load %arg5[%c0_15, %c0_16] : memref<128x4xf32, #tpu.memory_space<vmem>>, vector<128x4xf32>
      %cst_17 = arith.constant dense<0.000000e+00> : vector<16x4xf32>
      %16 = tpu.matmul %14, %15, %cst_17 {dimension_numbers = #tpu.dot_dimension_numbers<[1], [0], [0], [1], [0, 0, 1, 1], [], []>} : vector<16x128xf32>, vector<128x4xf32>, vector<16x4xf32> -> vector<16x4xf32>
      %c0_18 = arith.constant 0 : index
      %c0_19 = arith.constant 0 : index
      %17 = vector.load %arg6[%c0_18, %c0_19] : memref<1x4xf32, #tpu.memory_space<vmem>>, vector<1x4xf32>
      %18 = vector.broadcast %17 : vector<1x4xf32> to vector<16x4xf32>
      %19 = arith.addf %16, %18 : vector<16x4xf32>
      %cst_20 = arith.constant dense<0xFF800000> : vector<16xf32>
      %20 = vector.multi_reduction <maximumf>, %19, %cst_20 [1] : vector<16x4xf32> to vector<16xf32>
      %21 = vector.shape_cast %20 : vector<16xf32> to vector<16x1xf32>
      %22 = vector.broadcast %21 : vector<16x1xf32> to vector<16x4xf32>
      %23 = arith.subf %19, %22 : vector<16x4xf32>
      %24 = math.exp %23 : vector<16x4xf32>
      %cst_21 = arith.constant dense<0.000000e+00> : vector<16xf32>
      %25 = vector.multi_reduction <add>, %24, %cst_21 [1] : vector<16x4xf32> to vector<16xf32>
      %26 = vector.shape_cast %25 : vector<16xf32> to vector<16x1xf32>
      %27 = tpu.reciprocal %26 {approx = true} : vector<16x1xf32> -> vector<16x1xf32>
      %28 = vector.broadcast %27 : vector<16x1xf32> to vector<16x4xf32>
      %29 = arith.mulf %24, %28 : vector<16x4xf32>
      %c0_22 = arith.constant 0 : index
      %c0_23 = arith.constant 0 : index
      %30 = vector.load %arg12[%c0_22, %c0_23] : memref<16x4xf32, #tpu.memory_space<vmem>>, vector<16x4xf32>
      tpu.vector_store %arg12[%c0_22, %c0_23], %29 {strides = array<i32>} : memref<16x4xf32, #tpu.memory_space<vmem>>, vector<16x4xf32>,
      %31 = arith.truncf %14 : vector<16x128xf32> to vector<16x128xbf16>
      %c0_24 = arith.constant 0 : index
      %c0_25 = arith.constant 0 : index
      %32 = vector.load %arg8[%c0_24, %c0_25] : memref<128x512xbf16, #tpu.memory_space<vmem>>, vector<128x512xbf16>
      %cst_26 = arith.constant dense<0.000000e+00> : vector<16x512xf32>
      %33 = tpu.matmul %31, %32, %cst_26 {dimension_numbers = #tpu.dot_dimension_numbers<[1], [0], [0], [1], [0, 0, 1, 1], [], []>} : vector<16x128xbf16>, vector<128x512xbf16>, vector<16x512xf32> -> vector<16x512xf32>
      %34 = vector.extract_strided_slice %29 {offsets = [0, 0], sizes = [16, 1], strides = [1, 1]} : vector<16x4xf32> to vector<16x1xf32>
      %35 = vector.extract_strided_slice %33 {offsets = [0, 0], sizes = [16, 128], strides = [1, 1]} : vector<16x512xf32> to vector<16x128xf32>
      %36 = vector.broadcast %34 : vector<16x1xf32> to vector<16x128xf32>
      %37 = arith.mulf %36, %35 : vector<16x128xf32>
      %38 = vector.extract_strided_slice %29 {offsets = [0, 1], sizes = [16, 1], strides = [1, 1]} : vector<16x4xf32> to vector<16x1xf32>
      %39 = vector.extract_strided_slice %33 {offsets = [0, 128], sizes = [16, 128], strides = [1, 1]} : vector<16x512xf32> to vector<16x128xf32>
      %40 = vector.broadcast %38 : vector<16x1xf32> to vector<16x128xf32>
      %41 = arith.mulf %40, %39 : vector<16x128xf32>
      %42 = arith.addf %37, %41 : vector<16x128xf32>
      %43 = vector.extract_strided_slice %29 {offsets = [0, 2], sizes = [16, 1], strides = [1, 1]} : vector<16x4xf32> to vector<16x1xf32>
      %44 = vector.extract_strided_slice %33 {offsets = [0, 256], sizes = [16, 128], strides = [1, 1]} : vector<16x512xf32> to vector<16x128xf32>
      %45 = vector.broadcast %43 : vector<16x1xf32> to vector<16x128xf32>
      %46 = arith.mulf %45, %44 : vector<16x128xf32>
      %47 = arith.addf %42, %46 : vector<16x128xf32>
      %48 = vector.extract_strided_slice %29 {offsets = [0, 3], sizes = [16, 1], strides = [1, 1]} : vector<16x4xf32> to vector<16x1xf32>
      %49 = vector.extract_strided_slice %33 {offsets = [0, 384], sizes = [16, 128], strides = [1, 1]} : vector<16x512xf32> to vector<16x128xf32>
      %50 = vector.broadcast %48 : vector<16x1xf32> to vector<16x128xf32>
      %51 = arith.mulf %50, %49 : vector<16x128xf32>
      %52 = arith.addf %47, %51 : vector<16x128xf32>
      %c0_27 = arith.constant 0 : index
      %c0_28 = arith.constant 0 : index
      %53 = vector.load %arg13[%c0_27, %c0_28] : memref<16x128xf32, #tpu.memory_space<vmem>>, vector<16x128xf32>
      tpu.vector_store %arg13[%c0_27, %c0_28], %52 {strides = array<i32>} : memref<16x128xf32, #tpu.memory_space<vmem>>, vector<16x128xf32>,
    } else {
    }
    %c0 = arith.constant 0 : index
    %c0_1 = arith.constant 0 : index
    %3 = vector.load %arg11[%c0, %c0_1] : memref<16x128xf32, #tpu.memory_space<vmem>>, vector<16x128xf32>
    %c0_2 = arith.constant 0 : index
    %c0_3 = arith.constant 0 : index
    %4 = vector.load %arg2[%c0_2, %c0_3] : memref<16x32xbf16, #tpu.memory_space<vmem>>, vector<16x32xbf16>
    %c0_4 = arith.constant 0 : index
    %c0_5 = arith.constant 0 : index
    %5 = vector.load %arg3[%c0_4, %c0_5] : memref<32x128xbf16, #tpu.memory_space<vmem>>, vector<32x128xbf16>
    %cst = arith.constant dense<0.000000e+00> : vector<16x128xf32>
    %6 = tpu.matmul %4, %5, %cst {dimension_numbers = #tpu.dot_dimension_numbers<[1], [0], [0], [1], [0, 0, 1, 1], [], []>} : vector<16x32xbf16>, vector<32x128xbf16>, vector<16x128xf32> -> vector<16x128xf32>
    %7 = arith.addf %3, %6 : vector<16x128xf32>
    %c0_6 = arith.constant 0 : index
    %c0_7 = arith.constant 0 : index
    %8 = vector.load %arg11[%c0_6, %c0_7] : memref<16x128xf32, #tpu.memory_space<vmem>>, vector<16x128xf32>
    tpu.vector_store %arg11[%c0_6, %c0_7], %7 {strides = array<i32>} : memref<16x128xf32, #tpu.memory_space<vmem>>, vector<16x128xf32>,
    %c0_i32_8 = arith.constant 0 : i32
    %9 = arith.cmpi eq, %arg1, %c0_i32_8 : i32
    %10 = arith.extui %9 : i1 to i32
    %c0_i32_9 = arith.constant 0 : i32
    %11 = arith.cmpi ne, %10, %c0_i32_9 : i32
    scf.if %11 {
      %c0_10 = arith.constant 0 : index
      %c0_11 = arith.constant 0 : index
      %12 = vector.load %arg11[%c0_10, %c0_11] : memref<16x128xf32, #tpu.memory_space<vmem>>, vector<16x128xf32>
      %13 = arith.truncf %12 : vector<16x128xf32> to vector<16x128xbf16>
      %c0_12 = arith.constant 0 : index
      %c0_13 = arith.constant 0 : index
      %14 = vector.load %arg7[%c0_12, %c0_13] : memref<128x512xbf16, #tpu.memory_space<vmem>>, vector<128x512xbf16>
      %cst_14 = arith.constant dense<0.000000e+00> : vector<16x512xf32>
      %15 = tpu.matmul %13, %14, %cst_14 {dimension_numbers = #tpu.dot_dimension_numbers<[1], [0], [0], [1], [0, 0, 1, 1], [], []>} : vector<16x128xbf16>, vector<128x512xbf16>, vector<16x512xf32> -> vector<16x512xf32>
      %c0_15 = arith.constant 0 : index
      %c0_16 = arith.constant 0 : index
      %16 = vector.load %arg12[%c0_15, %c0_16] : memref<16x4xf32, #tpu.memory_space<vmem>>, vector<16x4xf32>
      %17 = vector.extract_strided_slice %16 {offsets = [0, 0], sizes = [16, 1], strides = [1, 1]} : vector<16x4xf32> to vector<16x1xf32>
      %18 = vector.extract_strided_slice %15 {offsets = [0, 0], sizes = [16, 128], strides = [1, 1]} : vector<16x512xf32> to vector<16x128xf32>
      %19 = vector.broadcast %17 : vector<16x1xf32> to vector<16x128xf32>
      %20 = arith.mulf %19, %18 : vector<16x128xf32>
      %21 = vector.extract_strided_slice %16 {offsets = [0, 1], sizes = [16, 1], strides = [1, 1]} : vector<16x4xf32> to vector<16x1xf32>
      %22 = vector.extract_strided_slice %15 {offsets = [0, 128], sizes = [16, 128], strides = [1, 1]} : vector<16x512xf32> to vector<16x128xf32>
      %23 = vector.broadcast %21 : vector<16x1xf32> to vector<16x128xf32>
      %24 = arith.mulf %23, %22 : vector<16x128xf32>
      %25 = arith.addf %20, %24 : vector<16x128xf32>
      %26 = vector.extract_strided_slice %16 {offsets = [0, 2], sizes = [16, 1], strides = [1, 1]} : vector<16x4xf32> to vector<16x1xf32>
      %27 = vector.extract_strided_slice %15 {offsets = [0, 256], sizes = [16, 128], strides = [1, 1]} : vector<16x512xf32> to vector<16x128xf32>
      %28 = vector.broadcast %26 : vector<16x1xf32> to vector<16x128xf32>
      %29 = arith.mulf %28, %27 : vector<16x128xf32>
      %30 = arith.addf %25, %29 : vector<16x128xf32>
      %31 = vector.extract_strided_slice %16 {offsets = [0, 3], sizes = [16, 1], strides = [1, 1]} : vector<16x4xf32> to vector<16x1xf32>
      %32 = vector.extract_strided_slice %15 {offsets = [0, 384], sizes = [16, 128], strides = [1, 1]} : vector<16x512xf32> to vector<16x128xf32>
      %33 = vector.broadcast %31 : vector<16x1xf32> to vector<16x128xf32>
      %34 = arith.mulf %33, %32 : vector<16x128xf32>
      %35 = arith.addf %30, %34 : vector<16x128xf32>
      %c0_17 = arith.constant 0 : index
      %c0_18 = arith.constant 0 : index
      %36 = vector.load %arg13[%c0_17, %c0_18] : memref<16x128xf32, #tpu.memory_space<vmem>>, vector<16x128xf32>
      %37 = arith.addf %35, %36 : vector<16x128xf32>
      %c0_19 = arith.constant 0 : index
      %c0_20 = arith.constant 0 : index
      %38 = vector.load %arg4[%c0_19, %c0_20] : memref<16x128xf32, #tpu.memory_space<vmem>>, vector<16x128xf32>
      %39 = arith.addf %37, %38 : vector<16x128xf32>
      %cst_21 = arith.constant 0.000000e+00 : f32
      %40 = vector.broadcast %cst_21 : f32 to vector<16x128xf32>
      %41 = arith.maximumf %39, %40 : vector<16x128xf32>
      %c0_22 = arith.constant 0 : index
      %c0_23 = arith.constant 0 : index
      %42 = vector.load %arg9[%c0_22, %c0_23] : memref<16x128xf32, #tpu.memory_space<vmem>>, vector<16x128xf32>
      tpu.vector_store %arg9[%c0_22, %c0_23], %41 {strides = array<i32>} : memref<16x128xf32, #tpu.memory_space<vmem>>, vector<16x128xf32>,
      %43 = arith.truncf %41 : vector<16x128xf32> to vector<16x128xbf16>
      %c0_24 = arith.constant 0 : index
      %c0_25 = arith.constant 0 : index
      %44 = vector.load %arg10[%c0_24, %c0_25] : memref<16x128xbf16, #tpu.memory_space<vmem>>, vector<16x128xbf16>
      tpu.vector_store %arg10[%c0_24, %c0_25], %43 {strides = array<i32>} : memref<16x128xbf16, #tpu.memory_space<vmem>>, vector<16x128xbf16>,
    } else {
    }
    return
  }
  func.func @transform_0(%arg0: i32, %arg1: i32) -> (i32, i32) {
    %c0_i32 = arith.constant 0 : i32
    return %arg0, %arg1 : i32, i32
  }
  func.func @transform_1(%arg0: i32, %arg1: i32) -> (i32, i32) {
    %c0_i32 = arith.constant 0 : i32
    %c0_i32_0 = arith.constant 0 : i32
    return %arg1, %c0_i32 : i32, i32
  }
  func.func @transform_2(%arg0: i32, %arg1: i32) -> (i32, i32) {
    %c0_i32 = arith.constant 0 : i32
    %c0_i32_0 = arith.constant 0 : i32
    return %arg0, %c0_i32 : i32, i32
  }
  func.func @transform_3(%arg0: i32, %arg1: i32) -> (i32, i32) {
    %c0_i32 = arith.constant 0 : i32
    %c0_i32_0 = arith.constant 0 : i32
    %c0_i32_1 = arith.constant 0 : i32
    return %c0_i32, %c0_i32_0 : i32, i32
  }
  func.func @transform_4(%arg0: i32, %arg1: i32) -> (i32, i32) {
    %c0_i32 = arith.constant 0 : i32
    %c0_i32_0 = arith.constant 0 : i32
    %c0_i32_1 = arith.constant 0 : i32
    return %c0_i32, %c0_i32_0 : i32, i32
  }
  func.func @transform_5(%arg0: i32, %arg1: i32) -> (i32, i32) {
    %c0_i32 = arith.constant 0 : i32
    %c0_i32_0 = arith.constant 0 : i32
    %c0_i32_1 = arith.constant 0 : i32
    return %c0_i32, %c0_i32_0 : i32, i32
  }
  func.func @transform_6(%arg0: i32, %arg1: i32) -> (i32, i32) {
    %c0_i32 = arith.constant 0 : i32
    %c0_i32_0 = arith.constant 0 : i32
    %c0_i32_1 = arith.constant 0 : i32
    return %c0_i32, %c0_i32_0 : i32, i32
  }
  func.func @transform_7(%arg0: i32, %arg1: i32) -> (i32, i32) {
    %c0_i32 = arith.constant 0 : i32
    %c0_i32_0 = arith.constant 0 : i32
    return %arg0, %c0_i32 : i32, i32
  }
  func.func @transform_8(%arg0: i32, %arg1: i32) -> (i32, i32) {
    %c0_i32 = arith.constant 0 : i32
    %c0_i32_0 = arith.constant 0 : i32
    return %arg0, %c0_i32 : i32, i32
  }
}

module attributes {stable_mosaic.version = 11 : i64} {
  func.func @_canet_layer_kernel(%arg0: i32, %arg1: i32, %arg2: memref<16x32xbf16, #tpu.memory_space<vmem>>, %arg3: memref<32x128xbf16, #tpu.memory_space<vmem>>, %arg4: memref<16x128xf32, #tpu.memory_space<vmem>>, %arg5: memref<128x4xf32, #tpu.memory_space<vmem>>, %arg6: memref<1x4xf32, #tpu.memory_space<vmem>>, %arg7: memref<128x512xbf16, #tpu.memory_space<vmem>>, %arg8: memref<128x512xbf16, #tpu.memory_space<vmem>>, %arg9: memref<16x128xf32, #tpu.memory_space<vmem>>, %arg10: memref<16x128xbf16, #tpu.memory_space<vmem>>, %arg11: memref<16x128xf32, #tpu.memory_space<vmem>>, %arg12: memref<16x4xf32, #tpu.memory_space<vmem>>, %arg13: memref<16x128xf32, #tpu.memory_space<vmem>>) attributes {dimension_semantics = [#tpu.dimension_semantics<parallel>, #tpu.dimension_semantics<arbitrary>], iteration_bounds = array<i64: 2, 1>, scalar_prefetch = 0 : i64, scratch_operands = 3 : i64, tpu.core_type = #tpu.core_type<tc>, window_params = [{transform_indices = @transform_0, window_bounds = array<i64: 16, 32>}, {transform_indices = @transform_1, window_bounds = array<i64: 32, 128>}, {transform_indices = @transform_2, window_bounds = array<i64: 16, 128>}, {pipeline_mode = #tpu.pipeline_mode<synchronous>, transform_indices = @transform_3, window_bounds = array<i64: 128, 4>}, {pipeline_mode = #tpu.pipeline_mode<synchronous>, transform_indices = @transform_4, window_bounds = array<i64: 1, 4>}, {pipeline_mode = #tpu.pipeline_mode<synchronous>, transform_indices = @transform_5, window_bounds = array<i64: 128, 512>}, {pipeline_mode = #tpu.pipeline_mode<synchronous>, transform_indices = @transform_6, window_bounds = array<i64: 128, 512>}, {transform_indices = @transform_7, window_bounds = array<i64: 16, 128>}, {transform_indices = @transform_8, window_bounds = array<i64: 16, 128>}]} {
    %c0_i32 = arith.constant 0 : i32
    %0 = arith.cmpi eq, %arg1, %c0_i32 : i32
    %1 = arith.extui %0 : i1 to i32
    %c0_i32_0 = arith.constant 0 : i32
    %2 = arith.cmpi ne, %1, %c0_i32_0 : i32
    scf.if %2 {
      %cst_10 = arith.constant 0.000000e+00 : f32
      %12 = vector.broadcast %cst_10 : f32 to vector<16x128xf32>
      %c0_11 = arith.constant 0 : index
      %c0_12 = arith.constant 0 : index
      %13 = vector.load %arg11[%c0_11, %c0_12] : memref<16x128xf32, #tpu.memory_space<vmem>>, vector<16x128xf32>
      tpu.vector_store %arg11[%c0_11, %c0_12], %12 {strides = array<i32>} : memref<16x128xf32, #tpu.memory_space<vmem>>, vector<16x128xf32>,
      %c0_13 = arith.constant 0 : index
      %c0_14 = arith.constant 0 : index
      %14 = vector.load %arg4[%c0_13, %c0_14] : memref<16x128xf32, #tpu.memory_space<vmem>>, vector<16x128xf32>
      %c0_15 = arith.constant 0 : index
      %c0_16 = arith.constant 0 : index
      %15 = vector.load %arg5[%c0_15, %c0_16] : memref<128x4xf32, #tpu.memory_space<vmem>>, vector<128x4xf32>
      %cst_17 = arith.constant dense<0.000000e+00> : vector<16x4xf32>
      %16 = tpu.matmul %14, %15, %cst_17 {dimension_numbers = #tpu.dot_dimension_numbers<[1], [0], [0], [1], [0, 0, 1, 1], [], []>} : vector<16x128xf32>, vector<128x4xf32>, vector<16x4xf32> -> vector<16x4xf32>
      %c0_18 = arith.constant 0 : index
      %c0_19 = arith.constant 0 : index
      %17 = vector.load %arg6[%c0_18, %c0_19] : memref<1x4xf32, #tpu.memory_space<vmem>>, vector<1x4xf32>
      %18 = vector.broadcast %17 : vector<1x4xf32> to vector<16x4xf32>
      %19 = arith.addf %16, %18 : vector<16x4xf32>
      %cst_20 = arith.constant dense<0xFF800000> : vector<16xf32>
      %20 = vector.multi_reduction <maximumf>, %19, %cst_20 [1] : vector<16x4xf32> to vector<16xf32>
      %21 = vector.shape_cast %20 : vector<16xf32> to vector<16x1xf32>
      %22 = vector.broadcast %21 : vector<16x1xf32> to vector<16x4xf32>
      %23 = arith.subf %19, %22 : vector<16x4xf32>
      %24 = math.exp %23 : vector<16x4xf32>
      %cst_21 = arith.constant dense<0.000000e+00> : vector<16xf32>
      %25 = vector.multi_reduction <add>, %24, %cst_21 [1] : vector<16x4xf32> to vector<16xf32>
      %26 = vector.shape_cast %25 : vector<16xf32> to vector<16x1xf32>
      %27 = tpu.reciprocal %26 {approx = true} : vector<16x1xf32> -> vector<16x1xf32>
      %28 = vector.broadcast %27 : vector<16x1xf32> to vector<16x4xf32>
      %29 = arith.mulf %24, %28 : vector<16x4xf32>
      %c0_22 = arith.constant 0 : index
      %c0_23 = arith.constant 0 : index
      %30 = vector.load %arg12[%c0_22, %c0_23] : memref<16x4xf32, #tpu.memory_space<vmem>>, vector<16x4xf32>
      tpu.vector_store %arg12[%c0_22, %c0_23], %29 {strides = array<i32>} : memref<16x4xf32, #tpu.memory_space<vmem>>, vector<16x4xf32>,
      %31 = arith.truncf %14 : vector<16x128xf32> to vector<16x128xbf16>
      %c0_24 = arith.constant 0 : index
      %c0_25 = arith.constant 0 : index
      %32 = vector.load %arg8[%c0_24, %c0_25] : memref<128x512xbf16, #tpu.memory_space<vmem>>, vector<128x512xbf16>
      %cst_26 = arith.constant dense<0.000000e+00> : vector<16x512xf32>
      %33 = tpu.matmul %31, %32, %cst_26 {dimension_numbers = #tpu.dot_dimension_numbers<[1], [0], [0], [1], [0, 0, 1, 1], [], []>} : vector<16x128xbf16>, vector<128x512xbf16>, vector<16x512xf32> -> vector<16x512xf32>
      %34 = vector.extract_strided_slice %29 {offsets = [0, 0], sizes = [16, 1], strides = [1, 1]} : vector<16x4xf32> to vector<16x1xf32>
      %35 = vector.extract_strided_slice %33 {offsets = [0, 0], sizes = [16, 128], strides = [1, 1]} : vector<16x512xf32> to vector<16x128xf32>
      %36 = vector.broadcast %34 : vector<16x1xf32> to vector<16x128xf32>
      %37 = arith.mulf %36, %35 : vector<16x128xf32>
      %38 = vector.extract_strided_slice %29 {offsets = [0, 1], sizes = [16, 1], strides = [1, 1]} : vector<16x4xf32> to vector<16x1xf32>
      %39 = vector.extract_strided_slice %33 {offsets = [0, 128], sizes = [16, 128], strides = [1, 1]} : vector<16x512xf32> to vector<16x128xf32>
      %40 = vector.broadcast %38 : vector<16x1xf32> to vector<16x128xf32>
      %41 = arith.mulf %40, %39 : vector<16x128xf32>
      %42 = arith.addf %37, %41 : vector<16x128xf32>
      %43 = vector.extract_strided_slice %29 {offsets = [0, 2], sizes = [16, 1], strides = [1, 1]} : vector<16x4xf32> to vector<16x1xf32>
      %44 = vector.extract_strided_slice %33 {offsets = [0, 256], sizes = [16, 128], strides = [1, 1]} : vector<16x512xf32> to vector<16x128xf32>
      %45 = vector.broadcast %43 : vector<16x1xf32> to vector<16x128xf32>
      %46 = arith.mulf %45, %44 : vector<16x128xf32>
      %47 = arith.addf %42, %46 : vector<16x128xf32>
      %48 = vector.extract_strided_slice %29 {offsets = [0, 3], sizes = [16, 1], strides = [1, 1]} : vector<16x4xf32> to vector<16x1xf32>
      %49 = vector.extract_strided_slice %33 {offsets = [0, 384], sizes = [16, 128], strides = [1, 1]} : vector<16x512xf32> to vector<16x128xf32>
      %50 = vector.broadcast %48 : vector<16x1xf32> to vector<16x128xf32>
      %51 = arith.mulf %50, %49 : vector<16x128xf32>
      %52 = arith.addf %47, %51 : vector<16x128xf32>
      %c0_27 = arith.constant 0 : index
      %c0_28 = arith.constant 0 : index
      %53 = vector.load %arg13[%c0_27, %c0_28] : memref<16x128xf32, #tpu.memory_space<vmem>>, vector<16x128xf32>
      tpu.vector_store %arg13[%c0_27, %c0_28], %52 {strides = array<i32>} : memref<16x128xf32, #tpu.memory_space<vmem>>, vector<16x128xf32>,
    } else {
    }
    %c0 = arith.constant 0 : index
    %c0_1 = arith.constant 0 : index
    %3 = vector.load %arg11[%c0, %c0_1] : memref<16x128xf32, #tpu.memory_space<vmem>>, vector<16x128xf32>
    %c0_2 = arith.constant 0 : index
    %c0_3 = arith.constant 0 : index
    %4 = vector.load %arg2[%c0_2, %c0_3] : memref<16x32xbf16, #tpu.memory_space<vmem>>, vector<16x32xbf16>
    %c0_4 = arith.constant 0 : index
    %c0_5 = arith.constant 0 : index
    %5 = vector.load %arg3[%c0_4, %c0_5] : memref<32x128xbf16, #tpu.memory_space<vmem>>, vector<32x128xbf16>
    %cst = arith.constant dense<0.000000e+00> : vector<16x128xf32>
    %6 = tpu.matmul %4, %5, %cst {dimension_numbers = #tpu.dot_dimension_numbers<[1], [0], [0], [1], [0, 0, 1, 1], [], []>} : vector<16x32xbf16>, vector<32x128xbf16>, vector<16x128xf32> -> vector<16x128xf32>
    %7 = arith.addf %3, %6 : vector<16x128xf32>
    %c0_6 = arith.constant 0 : index
    %c0_7 = arith.constant 0 : index
    %8 = vector.load %arg11[%c0_6, %c0_7] : memref<16x128xf32, #tpu.memory_space<vmem>>, vector<16x128xf32>
    tpu.vector_store %arg11[%c0_6, %c0_7], %7 {strides = array<i32>} : memref<16x128xf32, #tpu.memory_space<vmem>>, vector<16x128xf32>,
    %c0_i32_8 = arith.constant 0 : i32
    %9 = arith.cmpi eq, %arg1, %c0_i32_8 : i32
    %10 = arith.extui %9 : i1 to i32
    %c0_i32_9 = arith.constant 0 : i32
    %11 = arith.cmpi ne, %10, %c0_i32_9 : i32
    scf.if %11 {
      %c0_10 = arith.constant 0 : index
      %c0_11 = arith.constant 0 : index
      %12 = vector.load %arg11[%c0_10, %c0_11] : memref<16x128xf32, #tpu.memory_space<vmem>>, vector<16x128xf32>
      %13 = arith.truncf %12 : vector<16x128xf32> to vector<16x128xbf16>
      %c0_12 = arith.constant 0 : index
      %c0_13 = arith.constant 0 : index
      %14 = vector.load %arg7[%c0_12, %c0_13] : memref<128x512xbf16, #tpu.memory_space<vmem>>, vector<128x512xbf16>
      %cst_14 = arith.constant dense<0.000000e+00> : vector<16x512xf32>
      %15 = tpu.matmul %13, %14, %cst_14 {dimension_numbers = #tpu.dot_dimension_numbers<[1], [0], [0], [1], [0, 0, 1, 1], [], []>} : vector<16x128xbf16>, vector<128x512xbf16>, vector<16x512xf32> -> vector<16x512xf32>
      %c0_15 = arith.constant 0 : index
      %c0_16 = arith.constant 0 : index
      %16 = vector.load %arg12[%c0_15, %c0_16] : memref<16x4xf32, #tpu.memory_space<vmem>>, vector<16x4xf32>
      %17 = vector.extract_strided_slice %16 {offsets = [0, 0], sizes = [16, 1], strides = [1, 1]} : vector<16x4xf32> to vector<16x1xf32>
      %18 = vector.extract_strided_slice %15 {offsets = [0, 0], sizes = [16, 128], strides = [1, 1]} : vector<16x512xf32> to vector<16x128xf32>
      %19 = vector.broadcast %17 : vector<16x1xf32> to vector<16x128xf32>
      %20 = arith.mulf %19, %18 : vector<16x128xf32>
      %21 = vector.extract_strided_slice %16 {offsets = [0, 1], sizes = [16, 1], strides = [1, 1]} : vector<16x4xf32> to vector<16x1xf32>
      %22 = vector.extract_strided_slice %15 {offsets = [0, 128], sizes = [16, 128], strides = [1, 1]} : vector<16x512xf32> to vector<16x128xf32>
      %23 = vector.broadcast %21 : vector<16x1xf32> to vector<16x128xf32>
      %24 = arith.mulf %23, %22 : vector<16x128xf32>
      %25 = arith.addf %20, %24 : vector<16x128xf32>
      %26 = vector.extract_strided_slice %16 {offsets = [0, 2], sizes = [16, 1], strides = [1, 1]} : vector<16x4xf32> to vector<16x1xf32>
      %27 = vector.extract_strided_slice %15 {offsets = [0, 256], sizes = [16, 128], strides = [1, 1]} : vector<16x512xf32> to vector<16x128xf32>
      %28 = vector.broadcast %26 : vector<16x1xf32> to vector<16x128xf32>
      %29 = arith.mulf %28, %27 : vector<16x128xf32>
      %30 = arith.addf %25, %29 : vector<16x128xf32>
      %31 = vector.extract_strided_slice %16 {offsets = [0, 3], sizes = [16, 1], strides = [1, 1]} : vector<16x4xf32> to vector<16x1xf32>
      %32 = vector.extract_strided_slice %15 {offsets = [0, 384], sizes = [16, 128], strides = [1, 1]} : vector<16x512xf32> to vector<16x128xf32>
      %33 = vector.broadcast %31 : vector<16x1xf32> to vector<16x128xf32>
      %34 = arith.mulf %33, %32 : vector<16x128xf32>
      %35 = arith.addf %30, %34 : vector<16x128xf32>
      %c0_17 = arith.constant 0 : index
      %c0_18 = arith.constant 0 : index
      %36 = vector.load %arg13[%c0_17, %c0_18] : memref<16x128xf32, #tpu.memory_space<vmem>>, vector<16x128xf32>
      %37 = arith.addf %35, %36 : vector<16x128xf32>
      %c0_19 = arith.constant 0 : index
      %c0_20 = arith.constant 0 : index
      %38 = vector.load %arg4[%c0_19, %c0_20] : memref<16x128xf32, #tpu.memory_space<vmem>>, vector<16x128xf32>
      %39 = arith.addf %37, %38 : vector<16x128xf32>
      %cst_21 = arith.constant 0.000000e+00 : f32
      %40 = vector.broadcast %cst_21 : f32 to vector<16x128xf32>
      %41 = arith.maximumf %39, %40 : vector<16x128xf32>
      %c0_22 = arith.constant 0 : index
      %c0_23 = arith.constant 0 : index
      %42 = vector.load %arg9[%c0_22, %c0_23] : memref<16x128xf32, #tpu.memory_space<vmem>>, vector<16x128xf32>
      tpu.vector_store %arg9[%c0_22, %c0_23], %41 {strides = array<i32>} : memref<16x128xf32, #tpu.memory_space<vmem>>, vector<16x128xf32>,
      %43 = arith.truncf %41 : vector<16x128xf32> to vector<16x128xbf16>
      %c0_24 = arith.constant 0 : index
      %c0_25 = arith.constant 0 : index
      %44 = vector.load %arg10[%c0_24, %c0_25] : memref<16x128xbf16, #tpu.memory_space<vmem>>, vector<16x128xbf16>
      tpu.vector_store %arg10[%c0_24, %c0_25], %43 {strides = array<i32>} : memref<16x128xbf16, #tpu.memory_space<vmem>>, vector<16x128xbf16>,
    } else {
    }
    return
  }
  func.func @transform_0(%arg0: i32, %arg1: i32) -> (i32, i32) {
    %c0_i32 = arith.constant 0 : i32
    return %arg0, %arg1 : i32, i32
  }
  func.func @transform_1(%arg0: i32, %arg1: i32) -> (i32, i32) {
    %c0_i32 = arith.constant 0 : i32
    %c0_i32_0 = arith.constant 0 : i32
    return %arg1, %c0_i32 : i32, i32
  }
  func.func @transform_2(%arg0: i32, %arg1: i32) -> (i32, i32) {
    %c0_i32 = arith.constant 0 : i32
    %c0_i32_0 = arith.constant 0 : i32
    return %arg0, %c0_i32 : i32, i32
  }
  func.func @transform_3(%arg0: i32, %arg1: i32) -> (i32, i32) {
    %c0_i32 = arith.constant 0 : i32
    %c0_i32_0 = arith.constant 0 : i32
    %c0_i32_1 = arith.constant 0 : i32
    return %c0_i32, %c0_i32_0 : i32, i32
  }
  func.func @transform_4(%arg0: i32, %arg1: i32) -> (i32, i32) {
    %c0_i32 = arith.constant 0 : i32
    %c0_i32_0 = arith.constant 0 : i32
    %c0_i32_1 = arith.constant 0 : i32
    return %c0_i32, %c0_i32_0 : i32, i32
  }
  func.func @transform_5(%arg0: i32, %arg1: i32) -> (i32, i32) {
    %c0_i32 = arith.constant 0 : i32
    %c0_i32_0 = arith.constant 0 : i32
    %c0_i32_1 = arith.constant 0 : i32
    return %c0_i32, %c0_i32_0 : i32, i32
  }
  func.func @transform_6(%arg0: i32, %arg1: i32) -> (i32, i32) {
    %c0_i32 = arith.constant 0 : i32
    %c0_i32_0 = arith.constant 0 : i32
    %c0_i32_1 = arith.constant 0 : i32
    return %c0_i32, %c0_i32_0 : i32, i32
  }
  func.func @transform_7(%arg0: i32, %arg1: i32) -> (i32, i32) {
    %c0_i32 = arith.constant 0 : i32
    %c0_i32_0 = arith.constant 0 : i32
    return %arg0, %c0_i32 : i32, i32
  }
  func.func @transform_8(%arg0: i32, %arg1: i32) -> (i32, i32) {
    %c0_i32 = arith.constant 0 : i32
    %c0_i32_0 = arith.constant 0 : i32
    return %arg0, %c0_i32 : i32, i32
  }
}

</mosaic_0001>

<bundles_post_ra>
// kernel: canet_forward.4
= control target key start
LH: loop header
LB: loop body
LE: loop exit
PB: predicated region body
PF: predicated region fallthrough
CT: control target
= control target key end

     0   :  { %s367_s12 = smov 0   ;;  %s390_s0 = inlined_call_operand.vmem [shape: bf16[32,16], index: 0, kind: input, shape index: {}]   ;;  %s391_s1 = inlined_call_operand.vmem [shape: bf16[16,128], index: 1, kind: input, shape index: {}]   ;;  %s392_s2 = inlined_call_operand.vmem [shape: f32[1,128], index: 2, kind: input, shape index: {}]   ;;  %s393_s3 = inlined_call_operand.vmem [shape: f32[32,128], index: 3, kind: output, shape index: {}]  }
   0x1 LB: > { %s302_s13 = sadd.s32 4294967295, %s343_s12   ;;  %p306_p0 = scmp.ge.s32.totalorder %s343_s12, 1  ;;  %s343_s12 = sphi %s367_s12, %s13_s12  }
   0x2   : > { %p138_p1 = scmp.lt.s32.totalorder %s343_s12, 3 }
   0x4   : > { %p139_p2 = pnand %p306_p0, %p138_p1 }
   0x5   : > { %s307_s16 = sshll.u32 (!%p139_p2), %s302_s13, 1 }
   0x6   : > { %142 = sbr.rel (%p139_p2) target bundleno = 218 (0xda), region = 32  ;;  %p163_p3 = scmp.lt.s32.totalorder (!%p139_p2), %s307_s16, 3 }
   0xb   : > { %v335_v0 = vld [vmem:[%s391_s1] sm:$0xff]   ;;  %v345_v1 = vmov 0.0   ;;  %vm346_vm0 = vmmov 0   ;;  %s395_s16 = smov (!%p163_p3, %s307_s16), 3  ;;  %vm197_vm1 = vcmask 130048  }
   0xc   : > { %319 = vmatprep.subr.bf16.mxu0 %v345_v1  ;;  %321 = vmatprep.mubr.msk.bf16.mxu0 %vm346_vm0, %v345_v1  ;;  %s308_s17 = sshll.u32 %s395_s16, 2  ;;  %v311_v3 = vld [vmem:[%s392_s2] ss:$0 sm:$0xff]  ;;  %s310_s23 = sshll.u32 %s395_s16, 3 }
   0xd   : > { %320 = vmatpush3.bf16.msra.mxu0 %v335_v0  ;;  %s166_s20 = scalar_lea.vmem %s390_s0, %s308_s17  ;;  %s172_s26 = scalar_lea.vmem %s393_s3, %s310_s23 }
   0xe   : > { %v336_v2 = vld [vmem:[%s166_s20] sm:$0xff]  }
  0x10   : > { %322 = vmatmul.mubr.msk.bf16.vlgmr.msra.gmra.mxu0 %vm197_vm1, %v336_v2 }
  0xd0   : > { %v235_v4 = vpop.f32.mrf.mxu0 }
  0xd1   : > { %v236_v5 = vadd.f32 %v311_v3, %v235_v4 }
  0xd2   : > { %v323_v6 = vpop.f32.mrf.mxu0 }
  0xd3   : > { %v242_v7 = vmax.f32 %v236_v5, 0.0 }
  0xd4   : > { %v238_v8 = vpop.f32.mrf.mxu0 }
  0xd5   : > { %244 = vst [vmem:[%s172_s26] sm:$0xff] %v242_v7  ;;  %v239_v9 = vadd.f32 %v311_v3, %v238_v8 }
  0xd6   : > { %v324_v10 = vpop.f32.mrf.mxu0 }
  0xd7   : > { %v243_v11 = vmax.f32 %v239_v9, 0.0 }
  0xd9   : > { %245 = vst [vmem:[%s172_s26 + $0x8] sm:$0xff] %v243_v11 }
  0xda PF: > { %s13_s12 = sadd.s32 1, %s343_s12  }
  0xdb   : > { %p10_p4 = scmp.ge.s32.totalorder %s13_s12, 4  }
  0xdd   :  { %12 = sbr.rel (!%p10_p4) target bundleno = 1 (0x1), region = 62 }

// kernel: canet_forward.7
= control target key start
LH: loop header
LB: loop body
LE: loop exit
PB: predicated region body
PF: predicated region fallthrough
CT: control target
= control target key end

     0   :  { %s452_s12 = smov 0   ;;  %s496_s0 = inlined_call_operand.vmem [shape: bf16[32,128], index: 0, kind: input, shape index: {}]   ;;  %s497_s1 = inlined_call_operand.vmem [shape: bf16[128,128], index: 1, kind: input, shape index: {}]   ;;  %s498_s2 = inlined_call_operand.vmem [shape: f32[1,128], index: 2, kind: input, shape index: {}]   ;;  %s499_s3 = inlined_call_operand.vmem [shape: f32[32,128], index: 3, kind: output, shape index: {}]  }
   0x1 LB: > { %s353_s13 = sadd.s32 4294967295, %s428_s12   ;;  %p357_p0 = scmp.ge.s32.totalorder %s428_s12, 1  ;;  %s428_s12 = sphi %s452_s12, %s13_s12  }
   0x2   : > { %p138_p1 = scmp.lt.s32.totalorder %s428_s12, 3 }
   0x4   : > { %p139_p2 = pnand %p357_p0, %p138_p1 }
   0x5   : > { %s358_s18 = sshll.u32 (!%p139_p2), %s353_s13, 1 }
   0x6   : > { %142 = sbr.rel (%p139_p2) target bundleno = 244 (0xf4), region = 32  ;;  %p163_p3 = scmp.lt.s32.totalorder (!%p139_p2), %s358_s18, 3 }
   0xb   : > { %v413_v0 = vld [vmem:[%s497_s1 + $0x38] sm:$0xff]   ;;  %v430_v1 = vmov 0.0   ;;  %v414_v2 = vld [vmem:[%s497_s1 + $0x30] sm:$0xff]   ;;  %vm431_vm0 = vmmov 0   ;;  %s501_s18 = smov (!%p163_p3, %s358_s18), 3  ;;  %v415_v3 = vld [vmem:[%s497_s1 + $0x28] sm:$0xff]  }
   0xc   : > { %383 = vmatprep.subr.bf16.mxu0 %v430_v1  ;;  %399 = vmatprep.mubr.msk.bf16.mxu0 %vm431_vm0, %v430_v1  ;;  %s359_s21 = sshll.u32 %s501_s18, 2  ;;  %v416_v4 = vld [vmem:[%s497_s1 + $0x20] sm:$0xff]   ;;  %v417_v5 = vld [vmem:[%s497_s1 + $0x18] sm:$0xff]   ;;  %v418_v6 = vld [vmem:[%s497_s1 + $0x10] sm:$0xff]   ;;  %s361_s8 = sshll.u32 %s501_s18, 3 }
   0xd   : > { %384 = vmatpush3.bf16.msra.mxu0 %v413_v0  ;;  %s166_s24 = scalar_lea.vmem %s496_s0, %s359_s21  ;;  %v419_v7 = vld [vmem:[%s497_s1 + $0x8] sm:$0xff]   ;;  %v420_v8 = vld [vmem:[%s497_s1] sm:$0xff]   ;;  %s172_s14 = scalar_lea.vmem %s499_s3, %s361_s8 }
   0xe   : > { %385 = vmatprep.subr.bf16.mxu0 %v430_v1  ;;  %v421_v9 = vld [vmem:[%s166_s24] sm:$0xff]  }
   0xf   : > { %v362_v10 = vld [vmem:[%s498_s2] ss:$0 sm:$0xff] }
  0x11   : > { %386 = vmatpush3.bf16.msra.mxu0 %v414_v2 }
  0x12   : > { %387 = vmatprep.subr.bf16.mxu0 %v430_v1 }
  0x15   : > { %388 = vmatpush3.bf16.msra.mxu0 %v415_v3 }
  0x16   : > { %389 = vmatprep.subr.bf16.mxu0 %v430_v1 }
  0x19   : > { %390 = vmatpush3.bf16.msra.mxu0 %v416_v4 }
  0x1a   : > { %391 = vmatprep.subr.bf16.mxu0 %v430_v1 }
  0x1d   : > { %392 = vmatpush3.bf16.msra.mxu0 %v417_v5 }
  0x1e   : > { %393 = vmatprep.subr.bf16.mxu0 %v430_v1 }
  0x21   : > { %394 = vmatpush3.bf16.msra.mxu0 %v418_v6 }
  0x22   : > { %395 = vmatprep.subr.bf16.mxu0 %v430_v1 }
  0x25   : > { %396 = vmatpush3.bf16.msra.mxu0 %v419_v7 }
  0x26   : > { %397 = vmatprep.subr.bf16.mxu0 %v430_v1 }
  0x29   : > { %398 = vmatpush3.bf16.msra.mxu0 %v420_v8 }
  0x2c   : > { %400 = vmatmul.mubr.bf16.vlgmr.msra.gmra.mxu0 %v421_v9 }
  0xec   : > { %v288_v11 = vpop.f32.mrf.mxu0 }
  0xed   : > { %v289_v12 = vadd.f32 %v362_v10, %v288_v11 }
  0xee   : > { %v401_v13 = vpop.f32.mrf.mxu0 }
  0xef   : > { %295 = vst [vmem:[%s172_s14] sm:$0xff] %v289_v12 }
  0xf0   : > { %v291_v14 = vpop.f32.mrf.mxu0 }
  0xf1   : > { %v292_v15 = vadd.f32 %v362_v10, %v291_v14 }
  0xf2   : > { %v402_v16 = vpop.f32.mrf.mxu0 }
  0xf3   : > { %296 = vst [vmem:[%s172_s14 + $0x8] sm:$0xff] %v292_v15 }
  0xf4 PF: > { %s13_s12 = sadd.s32 1, %s428_s12  }
  0xf5   : > { %p10_p4 = scmp.ge.s32.totalorder %s13_s12, 4  }
  0xf7   :  { %12 = sbr.rel (!%p10_p4) target bundleno = 1 (0x1), region = 62 }

// kernel: canet_forward.6
= control target key start
LH: loop header
LB: loop body
LE: loop exit
PB: predicated region body
PF: predicated region fallthrough
CT: control target
= control target key end

     0   :  { %14 = vsyncpa [#allocation6], 0  ;;  %s2343_s0 = inlined_call_operand.vmem [shape: bf16[32,32], index: 0, kind: input, shape index: {}]   ;;  %s2344_s1 = inlined_call_operand.vmem [shape: bf16[32,128], index: 1, kind: input, shape index: {}]   ;;  %s2345_s2 = inlined_call_operand.vmem [shape: f32[32,128], index: 2, kind: input, shape index: {}]   ;;  %s2346_s3 = inlined_call_operand.vmem [shape: f32[128,4], index: 3, kind: input, shape index: {}]   ;;  %s2347_s4 = inlined_call_operand.vmem [shape: f32[1,4], index: 4, kind: input, shape index: {}]   ;;  %s2348_s5 = inlined_call_operand.vmem [shape: bf16[128,512], index: 5, kind: input, shape index: {}]   ;;  %s2349_s6 = inlined_call_operand.vmem [shape: bf16[128,512], index: 6, kind: input, shape index: {}]   ;;  %s2350_s7 = inlined_call_operand.hbm [shape: f32[32,128], index: 7, kind: output, shape index: {0}]   ;;  %s2351_s8 = inlined_call_operand.vmem [shape: bf16[32,128], index: 8, kind: output, shape index: {1}]  }
   0x1   :  { %16 = vsyncpa [#allocation6 + $0x1], 0  ;;  %s1905_s27 = smov 0   ;;  %s1907_s28 = smov 0  }
   0x2   :  { %s1909_s29 = smov 0   ;;  %s1911_s30 = smov 0  }
   0x3   :  { %s1913_s9 = smov 0   ;;  %s1915_s10 = smov 0  }
   0x4 LB: > { %s1427_s11 = sadd.s32 4294967295, %s1849_s10   ;;  %s1428_s12 = sadd.s32 4294967294, %s1849_s10   ;;  %s1849_s10 = sphi %s1915_s10, %s22_s10   ;;  %s1845_s9 = sphi %s1913_s9, %s2361_s9   ;;  %s1841_s30 = sphi %s1911_s30, %s2360_s30   ;;  %s1837_s29 = sphi %s1909_s29, %s2359_s29   ;;  %s1833_s28 = sphi %s1907_s28, %s2358_s28   ;;  %s1829_s27 = sphi %s1905_s27, %s2357_s27  }
   0x5   : > { %s34_s13 = sadd.s32 1, %s1845_s9  ;;  %s205_s14 = sadd.s32 1, %s1837_s29 }
   0x6   : > { %p36_p0 = scmp.ge.s32.totalorder %s34_s13, 2  ;;  %p215_p1 = scmp.ne.s32.totalorder %s1837_s29, %s1833_s28 }
   0x7   : > { %p216_p2 = scmp.eq.s32.totalorder %s1427_s11, 1  ;;  %p221_p3 = scmp.ne.s32.totalorder %s1833_s28, %s1829_s27 }
   0x8   : > { %s2363_s13 = smov (%p36_p0, %s34_s13), 0  ;;  %p222_p5 = scmp.eq.s32.totalorder %s1428_s12, 1 }
   0x9   : > { %2353 = sst [smem:[#allocation8_spill]] %s2363_s13  ;;  %p1945_p4 = por %p216_p2, %p215_p1 }
   0xa   : > { %s202_s16 = ssub.s32 %s1845_s9, %s2363_s13  ;;  %p1432_p6 = scmp.ge.s32.totalorder %s1849_s10, 1 }
   0xb   : > { %p203_p7 = scmp.eq.s32.totalorder %s202_s16, 0  ;;  %p1952_p8 = por %p222_p5, %p221_p3 }
   0xc   : > { %p308_p9 = scmp.lt.s32.totalorder %s1849_s10, 3 }
   0xd   : > { %s1958_s18 = scalar_select %p203_p7, %s1837_s29, %s205_s14  }
   0xe   : > { %p309_p10 = pnand %p1432_p6, %p308_p9 }
   0xf   : > { %s1434_s23 = sshll.u32 (!%p309_p10), %s1841_s30, 1  ;;  %s350_s26 = sand.u32 (!%p309_p10), 1, %s1833_s28  }
  0x10   : > { %312 = sbr.rel (%p309_p10) target bundleno = 770 (0x302), region = 48  ;;  %p361_p11 = scmp.lt.s32.totalorder (!%p309_p10), %s1434_s23, 3 }
  0x15   : > { %v412_v0 = vld [vmem:[%s2346_s3 + $0x78] sm:$0xff]  ;;  %v411_v1 = vld [vmem:[%s2346_s3 + $0x70] sm:$0xff]  ;;  %v410_v2 = vld [vmem:[%s2346_s3 + $0x68] sm:$0xff]  ;;  %s2365_s23 = smov (!%p361_p11, %s1434_s23), 3  ;;  %v1851_v23 = vmov 0   ;;  %v1852_v37 = vmov 0.0  }
  0x16   : > { %1545 = vmatprep.subr.mxu0 %v412_v0  ;;  %v409_v3 = vld [vmem:[%s2346_s3 + $0x60] sm:$0xff]  ;;  %v408_v4 = vld [vmem:[%s2346_s3 + $0x58] sm:$0xff]  ;;  %s1435_s16 = sshll.u32 %s2365_s23, 2  ;;  %s1437_s19 = sshll.u32 %s2365_s23, 3  ;;  %v407_v5 = vld [vmem:[%s2346_s3 + $0x50] sm:$0xff]  ;;  %745 = vmatprep.mubr.bf16.mxu1 %v1851_v23  ;;  %vm1853_vm0 = vmmov 0  }
  0x17   : > { %1546 = vmatpush3.msra.mxu0 %v412_v0  ;;  %s1985_s22 = scalar_lea.vmem %s2343_s0, %s1435_s16  ;;  %s1990_s13 = scalar_lea.vmem %s2345_s2, %s1437_s19  ;;  %v406_v7 = vld [vmem:[%s2346_s3 + $0x48] sm:$0xff]  ;;  %v405_v8 = vld [vmem:[%s2346_s3 + $0x40] sm:$0xff]  ;;  %v404_v9 = vld [vmem:[%s2346_s3 + $0x38] sm:$0xff]  ;;  %1651 = vset.pattern.permute.xlu1 %v1851_v23  ;;  %vm874_vm1 = vcmask 261120   ;;  %vm495_vm2 = vcmask 31744  }
  0x18   : > { %1547 = vmatprep.subr.mxu0 %v411_v1  ;;  %v1996_v6 = vld [vmem:[%s1990_s13] sm:$0xff]  ;;  %v403_v10 = vld [vmem:[%s2346_s3 + $0x30] sm:$0xff]  ;;  %v402_v11 = vld [vmem:[%s2346_s3 + $0x28] sm:$0xff]  ;;  %s2293_s25 = scalar_lea.vmem %s2351_s8, %s1435_s16 }
  0x19   : > { %1548 = vmatpush3.msra.mxu0 %v411_v1  ;;  %1577 = vmatprep.mubr.f32.mxu0 %v1996_v6  ;;  %v401_v12 = vld [vmem:[%s2346_s3 + $0x20] sm:$0xff]  ;;  %v400_v13 = vld [vmem:[%s2346_s3 + $0x18] sm:$0xff]  ;;  %v399_v14 = vld [vmem:[%s2346_s3 + $0x10] sm:$0xff] }
  0x1a   : > { %1549 = vmatprep.subr.mxu0 %v410_v2  ;;  %v398_v15 = vld [vmem:[%s2346_s3 + $0x8] sm:$0xff]  ;;  %v397_v16 = vld [vmem:[%s2346_s3] sm:$0xff] }
  0x1b   : > { %1550 = vmatpush3.msra.mxu0 %v410_v2  ;;  %v2030_v17 = vld [vmem:[%s1990_s13 + $0x8] sm:$0xff]  ;;  %v1667_v18 = vld [vmem:[%s2349_s6 + $0xe4] ss:$16 sps:$4 sm:$0xff]   ;;  %v1669_v19 = vld [vmem:[%s2349_s6 + $0xe0] ss:$16 sps:$4 sm:$0xff]   ;;  %s1433_s13 = sshll.u32 %s350_s26, 4 }
  0x1c   : > { %1551 = vmatprep.subr.mxu0 %v409_v3  ;;  %v1670_v20 = vld [vmem:[%s2349_s6 + $0xc4] ss:$16 sps:$4 sm:$0xff]   ;;  %713 = vmatprep.subr.bf16.mxu1 %v1667_v18  ;;  %v1672_v21 = vld [vmem:[%s2349_s6 + $0xc0] ss:$16 sps:$4 sm:$0xff]   ;;  %v2086_v35 = vpack.c.bf16 %v2030_v17, %v1996_v6  ;;  %v1691_v36 = vld [vmem:[%s2344_s1 + $0x8] sm:$0xff]   ;;  %s352_s11 = scalar_lea.vmem [#allocation5], %s1433_s13 }
  0x1d   : > { %1552 = vmatpush3.msra.mxu0 %v409_v3  ;;  %714 = vmatpush1.bf16.msra.mxu1 %v1669_v19  ;;  %v1673_v22 = vld [vmem:[%s2349_s6 + $0xa4] ss:$16 sps:$4 sm:$0xff]   ;;  %v1675_v24 = vld [vmem:[%s2349_s6 + $0xa0] ss:$16 sps:$4 sm:$0xff]   ;;  %v1693_v47 = vld [vmem:[%s2349_s6 + $0xe8] ss:$16 sps:$4 sm:$0xff]  }
  0x1e   : > { %1553 = vmatprep.subr.mxu0 %v408_v4  ;;  %715 = vmatprep.subr.bf16.mxu1 %v1670_v20  ;;  %v1676_v25 = vld [vmem:[%s2349_s6 + $0x84] ss:$16 sps:$4 sm:$0xff]   ;;  %v1678_v26 = vld [vmem:[%s2349_s6 + $0x80] ss:$16 sps:$4 sm:$0xff]   ;;  %v1695_v48 = vld [vmem:[%s2349_s6 + $0xec] ss:$16 sps:$4 sm:$0xff]  }
  0x1f   : > { %1554 = vmatpush3.msra.mxu0 %v408_v4  ;;  %v1679_v27 = vld [vmem:[%s2349_s6 + $0x64] ss:$16 sps:$4 sm:$0xff]   ;;  %v1681_v28 = vld [vmem:[%s2349_s6 + $0x60] ss:$16 sps:$4 sm:$0xff]   ;;  %v1698_v49 = vld [vmem:[%s2349_s6 + $0xcc] ss:$16 sps:$4 sm:$0xff]  }
  0x20   : > { %1555 = vmatprep.subr.mxu0 %v407_v5  ;;  %v1682_v29 = vld [vmem:[%s2349_s6 + $0x44] ss:$16 sps:$4 sm:$0xff]   ;;  %v1684_v30 = vld [vmem:[%s2349_s6 + $0x40] ss:$16 sps:$4 sm:$0xff]   ;;  %v1696_v50 = vld [vmem:[%s2349_s6 + $0xc8] ss:$16 sps:$4 sm:$0xff]  }
  0x21   : > { %1556 = vmatpush3.msra.mxu0 %v407_v5  ;;  %716 = vmatpush1.bf16.msra.mxu1 %v1672_v21  ;;  %v1685_v31 = vld [vmem:[%s2349_s6 + $0x24] ss:$16 sps:$4 sm:$0xff]   ;;  %v1687_v32 = vld [vmem:[%s2349_s6 + $0x20] ss:$16 sps:$4 sm:$0xff]   ;;  %v1701_v51 = vld [vmem:[%s2349_s6 + $0xac] ss:$16 sps:$4 sm:$0xff]  }
  0x22   : > { %1557 = vmatprep.subr.mxu0 %v406_v7  ;;  %717 = vmatprep.subr.bf16.mxu1 %v1673_v22  ;;  %v1688_v33 = vld [vmem:[%s2349_s6 + $0x4] ss:$16 sps:$4 sm:$0xff]   ;;  %v1690_v34 = vld [vmem:[%s2349_s6] ss:$16 sps:$4 sm:$0xff]   ;;  %v1699_v52 = vld [vmem:[%s2349_s6 + $0xa8] ss:$16 sps:$4 sm:$0xff]  }
  0x23   : > { %1558 = vmatpush3.msra.mxu0 %v406_v7  ;;  %v1692_v38 = vld [vmem:[%s2344_s1] sm:$0xff]   ;;  %v1704_v53 = vld [vmem:[%s2349_s6 + $0x8c] ss:$16 sps:$4 sm:$0xff]   ;;  %v1702_v57 = vld [vmem:[%s2349_s6 + $0x88] ss:$16 sps:$4 sm:$0xff]   ;;  %s1298_s12 = sshll.u32 %s352_s11, 4  ;;  %s2286_s12 = int_to_ptr.vmem [resolvable:$true] %s1298_s12 }
  0x24   : > { %1559 = vmatprep.subr.mxu0 %v405_v8  ;;  %v1666_v39 = vld [vmem:[%s1985_s22] sm:$0xff]   ;;  %v1707_v59 = vld [vmem:[%s2349_s6 + $0x6c] ss:$16 sps:$4 sm:$0xff]   ;;  %v1705_v61 = vld [vmem:[%s2349_s6 + $0x68] ss:$16 sps:$4 sm:$0xff]   ;;  %s1518_s22 = sshll.u32 %s1841_s30, 8 }
  0x25   : > { %1560 = vmatpush3.msra.mxu0 %v405_v8  ;;  %718 = vmatpush1.bf16.msra.mxu1 %v1675_v24  ;;  %v1440_v41 = vld [vmem:[%s2347_s4] ss:$0 sm:$0xff]  ;;  %v1731_v55 = vld [vmem:[%s2348_s5 + $0xe4] ss:$16 sps:$4 sm:$0xff]   ;;  %v1710_v63 = vld [vmem:[%s2349_s6 + $0x4c] ss:$16 sps:$4 sm:$0xff]   ;;  %s2284_s19 = scalar_lea.hbm %s2350_s7, %s1518_s22 }
  0x26   : > { %1561 = vmatprep.subr.mxu0 %v404_v9  ;;  %719 = vmatprep.subr.bf16.mxu1 %v1676_v25  ;;  %v1729_v54 = vld [vmem:[%s2348_s5 + $0xe0] ss:$16 sps:$4 sm:$0xff]   ;;  %v1737_v56 = vld [vmem:[%s2348_s5 + $0xc4] ss:$16 sps:$4 sm:$0xff]   ;;  %v1708_v1 = vld [vmem:[%s2349_s6 + $0x48] ss:$16 sps:$4 sm:$0xff]  }
  0x27   : > { %1562 = vmatpush3.msra.mxu0 %v404_v9  ;;  %v1735_v58 = vld [vmem:[%s2348_s5 + $0xc0] ss:$16 sps:$4 sm:$0xff]   ;;  %v1743_v60 = vld [vmem:[%s2348_s5 + $0xa4] ss:$16 sps:$4 sm:$0xff]   ;;  %v1713_v3 = vld [vmem:[%s2349_s6 + $0x2c] ss:$16 sps:$4 sm:$0xff]  }
  0x28   : > { %1563 = vmatprep.subr.mxu0 %v403_v10  ;;  %v1741_v62 = vld [vmem:[%s2348_s5 + $0xa0] ss:$16 sps:$4 sm:$0xff]   ;;  %v1749_v0 = vld [vmem:[%s2348_s5 + $0x84] ss:$16 sps:$4 sm:$0xff]   ;;  %v1711_v5 = vld [vmem:[%s2349_s6 + $0x28] ss:$16 sps:$4 sm:$0xff]  }
  0x29   : > { %1564 = vmatpush3.msra.mxu0 %v403_v10  ;;  %720 = vmatpush1.bf16.msra.mxu1 %v1678_v26  ;;  %v1747_v2 = vld [vmem:[%s2348_s5 + $0x80] ss:$16 sps:$4 sm:$0xff]   ;;  %v1755_v4 = vld [vmem:[%s2348_s5 + $0x64] ss:$16 sps:$4 sm:$0xff]   ;;  %v1716_v8 = vld [vmem:[%s2349_s6 + $0xc] ss:$16 sps:$4 sm:$0xff]  }
  0x2a   : > { %1565 = vmatprep.subr.mxu0 %v402_v11  ;;  %721 = vmatprep.subr.bf16.mxu1 %v1679_v27  ;;  %v1753_v7 = vld [vmem:[%s2348_s5 + $0x60] ss:$16 sps:$4 sm:$0xff]   ;;  %v1758_v9 = vld [vmem:[%s2348_s5 + $0x44] ss:$16 sps:$4 sm:$0xff]   ;;  %v1714_v10 = vld [vmem:[%s2349_s6 + $0x8] ss:$16 sps:$4 sm:$0xff]  }
  0x2b   : > { %1566 = vmatpush3.msra.mxu0 %v402_v11  ;;  %v1756_v11 = vld [vmem:[%s2348_s5 + $0x40] ss:$16 sps:$4 sm:$0xff]   ;;  %v1764_v18 = vld [vmem:[%s2348_s5 + $0x4] ss:$16 sps:$4 sm:$0xff]   ;;  %v1720_v19 = vld [vmem:[%s2348_s5 + $0xc8] ss:$16 sps:$4 sm:$0xff]  }
  0x2c   : > { %1567 = vmatprep.subr.mxu0 %v401_v12  ;;  %v1725_v20 = vld [vmem:[%s2348_s5 + $0xac] ss:$16 sps:$4 sm:$0xff]   ;;  %v1762_v21 = vld [vmem:[%s2348_s5] ss:$16 sps:$4 sm:$0xff]   ;;  %v1723_v22 = vld [vmem:[%s2348_s5 + $0xa8] ss:$16 sps:$4 sm:$0xff]  }
  0x2d   : > { %1568 = vmatpush3.msra.mxu0 %v401_v12  ;;  %722 = vmatpush1.bf16.msra.mxu1 %v1681_v28  ;;  %v1719_v12 = vld [vmem:[%s2348_s5 + $0xec] ss:$16 sps:$4 sm:$0xff]   ;;  %v1726_v25 = vld [vmem:[%s2348_s5 + $0x88] ss:$16 sps:$4 sm:$0xff]   ;;  %s2297_s30 = scalar_lea.sflag [#allocation6], %s350_s26  ;;  %s1773_s13 = scalar_lea.vmem %s2286_s12, 256 }
  0x2e   : > { %1569 = vmatprep.subr.mxu0 %v400_v13  ;;  %723 = vmatprep.subr.bf16.mxu1 %v1682_v29  ;;  %v1728_v24 = vld [vmem:[%s2348_s5 + $0x8c] ss:$16 sps:$4 sm:$0xff]   ;;  %v1732_v27 = vld [vmem:[%s2348_s5 + $0x68] ss:$16 sps:$4 sm:$0xff]   ;;  %p1774_p12 = scmp.ne.s32.totalorder %s2286_s12, %s1773_s13  ;;  %s1857_s22 = smov [#allocation5]  }
  0x2f   : > { %1570 = vmatpush3.msra.mxu0 %v400_v13  ;;  %v1761_v13 = vld [vmem:[%s2348_s5 + $0x24] ss:$16 sps:$4 sm:$0xff]   ;;  %v1734_v26 = vld [vmem:[%s2348_s5 + $0x6c] ss:$16 sps:$4 sm:$0xff]   ;;  %v1738_v29 = vld [vmem:[%s2348_s5 + $0x48] ss:$16 sps:$4 sm:$0xff]  }
  0x30   : > { %1571 = vmatprep.subr.mxu0 %v399_v14  ;;  %v1740_v28 = vld [vmem:[%s2348_s5 + $0x4c] ss:$16 sps:$4 sm:$0xff]   ;;  %p1775_p13 = pnand %p1774_p12, %p1945_p4  ;;  %s1777_s14 = sshll.u32 %s1857_s22, 4  ;;  %s1778_s14 = int_to_ptr.vmem [resolvable:$false] %s1777_s14 }
  0x31   : > { %1572 = vmatpush3.msra.mxu0 %v399_v14  ;;  %724 = vmatpush1.bf16.msra.mxu1 %v1684_v30  ;;  %v1717_v14 = vld [vmem:[%s2348_s5 + $0xe8] ss:$16 sps:$4 sm:$0xff]   ;;  %v1746_v30 = vld [vmem:[%s2348_s5 + $0x2c] ss:$16 sps:$4 sm:$0xff]   ;;  %s1779_s20 = scalar_lea.vmem %s1778_s14, 512  ;;  %p1780_p1 = scmp.lt.s32.totalorder %s2286_s12, %s1778_s14 }
  0x32   : > { %1573 = vmatprep.subr.mxu0 %v398_v15  ;;  %725 = vmatprep.subr.bf16.mxu1 %v1685_v31  ;;  %v1744_v31 = vld [vmem:[%s2348_s5 + $0x28] ss:$16 sps:$4 sm:$0xff]   ;;  %p1776_p0 = pneg %p1775_p13  ;;  %p1781_p2 = scmp.lt.s32.totalorder %s1779_s20, %s1773_s13 }
  0x33   : > { %1574 = vmatpush3.msra.mxu0 %v398_v15  ;;  %v1722_v15 = vld [vmem:[%s2348_s5 + $0xcc] ss:$16 sps:$4 sm:$0xff]  }
  0x34   : > { %1575 = vmatprep.subr.mxu0 %v397_v16  ;;  %p1782_p3 = por %p1781_p2, %p1780_p1 }
  0x35   : > { %1576 = vmatpush3.msra.mxu0 %v397_v16  ;;  %726 = vmatpush1.bf16.msra.mxu1 %v1687_v32  ;;  %v1759_v16 = vld [vmem:[%s2348_s5 + $0x20] ss:$16 sps:$4 sm:$0xff]   ;;  %v1752_v32 = vld [vmem:[%s2348_s5 + $0xc] ss:$16 sps:$4 sm:$0xff]  }
  0x36   : > { %1578 = vmatmul.mubr.f32.vlgmr.msra.gmra.mxu0 %v2030_v17  ;;  %727 = vmatprep.subr.bf16.mxu1 %v1688_v33  ;;  %v1750_v33 = vld [vmem:[%s2348_s5 + $0x8] ss:$16 sps:$4 sm:$0xff]   ;;  %p1783_p5 = pnand %p1782_p3, %p1776_p0 }
  0x37   : > { %788 = vmatprep.mubr.bf16.mxu0 %v1851_v23  ;;  %756 = vmatprep.subr.bf16.mxu0 %v1695_v48 }
  0x38   : > { %757 = vmatpush1.bf16.msra.mxu0 %v1693_v47 }
  0x39   : > { %728 = vmatpush1.bf16.msra.mxu1 %v1690_v34  ;;  %758 = vmatprep.subr.bf16.mxu0 %v1698_v49 }
  0x3a   : > { %1580 = vmatprep.subr.bf16.mxu1 %v1852_v37 }
  0x3c   : > { %746 = vmatmul.mubr.bf16.vlgmr.msra.gmra.mxu1 %v2086_v35  ;;  %759 = vmatpush1.bf16.msra.mxu0 %v1696_v50 }
  0x3d   : > { %1581 = vmatpush3.bf16.msra.mxu1 %v1691_v36  ;;  %1584 = vmatprep.mubr.msk.bf16.mxu1 %vm1853_vm0, %v1852_v37 }
  0x3e   : > { %1582 = vmatprep.subr.bf16.mxu1 %v1852_v37  ;;  %760 = vmatprep.subr.bf16.mxu0 %v1701_v51 }
  0x40   : > { %761 = vmatpush1.bf16.msra.mxu0 %v1699_v52 }
  0x41   : > { %1583 = vmatpush3.bf16.msra.mxu1 %v1692_v38  ;;  %762 = vmatprep.subr.bf16.mxu0 %v1704_v53 }
  0x42   : > { %1121 = vmatprep.subr.bf16.mxu1 %v1731_v55  ;;  %v1854_v55 = vmov 2  }
  0x43   : > { %1653 = vset.pattern.permute.xlu0 %v1854_v55 }
  0x44   : > { %1585 = vmatmul.mubr.msk.bf16.vlgmr.msra.gmra.mxu1 %vm874_vm1, %v1666_v39  ;;  %763 = vmatpush1.bf16.msra.mxu0 %v1702_v57 }
  0x45   : > { %1153 = vmatprep.mubr.bf16.mxu1 %v1851_v23  ;;  %1122 = vmatpush1.bf16.msra.mxu1 %v1729_v54 }
  0x46   : > { %1123 = vmatprep.subr.bf16.mxu1 %v1737_v56  ;;  %764 = vmatprep.subr.bf16.mxu0 %v1707_v59 }
  0x48   : > { %765 = vmatpush1.bf16.msra.mxu0 %v1705_v61  ;;  %v1856_v61 = vmov 3  }
  0x49   : > { %1124 = vmatpush1.bf16.msra.mxu1 %v1735_v58  ;;  %766 = vmatprep.subr.bf16.mxu0 %v1710_v63 }
  0x4a   : > { %1125 = vmatprep.subr.bf16.mxu1 %v1743_v60  ;;  %v1855_v60 = vmov 1  }
  0x4c   : > { %767 = vmatpush1.bf16.msra.mxu0 %v1708_v1 }
  0x4d   : > { %1126 = vmatpush1.bf16.msra.mxu1 %v1741_v62  ;;  %768 = vmatprep.subr.bf16.mxu0 %v1713_v3 }
  0x4e   : > { %1127 = vmatprep.subr.bf16.mxu1 %v1749_v0 }
  0x50   : > { %769 = vmatpush1.bf16.msra.mxu0 %v1711_v5 }
  0x51   : > { %1128 = vmatpush1.bf16.msra.mxu1 %v1747_v2  ;;  %770 = vmatprep.subr.bf16.mxu0 %v1716_v8 }
  0x52   : > { %1129 = vmatprep.subr.bf16.mxu1 %v1755_v4 }
  0x54   : > { %771 = vmatpush1.bf16.msra.mxu0 %v1714_v10 }
  0x55   : > { %1130 = vmatpush1.bf16.msra.mxu1 %v1753_v7  ;;  %1164 = vmatprep.subr.bf16.mxu0 %v1719_v12 }
  0x56   : > { %1131 = vmatprep.subr.bf16.mxu1 %v1758_v9 }
  0x57   : > { %789 = vmatmul.mubr.bf16.vlgmr.msra.gmra.mxu0 %v2086_v35 }
  0x58   : > { %1165 = vmatpush1.bf16.msra.mxu0 %v1717_v14  ;;  %1196 = vmatprep.mubr.bf16.mxu0 %v1851_v23 }
  0x59   : > { %1132 = vmatpush1.bf16.msra.mxu1 %v1756_v11  ;;  %1166 = vmatprep.subr.bf16.mxu0 %v1722_v15 }
  0x5a   : > { %1133 = vmatprep.subr.bf16.mxu1 %v1761_v13 }
  0x5c   : > { %1167 = vmatpush1.bf16.msra.mxu0 %v1720_v19 }
  0x5d   : > { %1134 = vmatpush1.bf16.msra.mxu1 %v1759_v16  ;;  %1168 = vmatprep.subr.bf16.mxu0 %v1725_v20 }
  0x5e   : > { %1135 = vmatprep.subr.bf16.mxu1 %v1764_v18 }
  0x60   : > { %1169 = vmatpush1.bf16.msra.mxu0 %v1723_v22 }
  0x61   : > { %1136 = vmatpush1.bf16.msra.mxu1 %v1762_v21  ;;  %1170 = vmatprep.subr.bf16.mxu0 %v1728_v24 }
  0x64   : > { %1171 = vmatpush1.bf16.msra.mxu0 %v1726_v25 }
  0x65   : > { %1172 = vmatprep.subr.bf16.mxu0 %v1734_v26 }
  0x68   : > { %1173 = vmatpush1.bf16.msra.mxu0 %v1732_v27 }
  0x69   : > { %1174 = vmatprep.subr.bf16.mxu0 %v1740_v28 }
  0x6c   : > { %1175 = vmatpush1.bf16.msra.mxu0 %v1738_v29 }
  0x6d   : > { %1176 = vmatprep.subr.bf16.mxu0 %v1746_v30 }
  0x70   : > { %1177 = vmatpush1.bf16.msra.mxu0 %v1744_v31 }
  0x71   : > { %1178 = vmatprep.subr.bf16.mxu0 %v1752_v32 }
  0x74   : > { %1179 = vmatpush1.bf16.msra.mxu0 %v1750_v33 }
  0xf6   : > { %v1579_v40 = vpop.f32.mrf.mxu0 }
  0xf7   : > { %v2102_v44 = vadd.f32 %v1579_v40, %v1440_v41 }
  0xf8   : > { %v486_v42 = vpop.f32.mrf.mxu0 }
  0xf9   : > { %v2100_v43 = vadd.f32 %v1440_v41, %v486_v42  ;;  %v499_v46 = vsel %vm495_vm2, %v2102_v44, -inf }
  0xfb   : > { %v496_v45 = vsel %vm495_vm2, %v2100_v43, -inf }
  0xfc   : > { %497 = vmax.xlane.f32.xlu0 %v496_v45  ;;  %v2254_v34 = vpop.f32.mrf.mxu1 }
  0xfe   : > { %v2256_v35 = vpop.f32.mrf.mxu1 }
 0x100   : > { %500 = vmax.xlane.f32.xlu0 %v499_v46  ;;  %v2258_v36 = vpop.f32.mrf.mxu1 }
 0x102   : > { %v2260_v37 = vpop.f32.mrf.mxu1 }
 0x104   : > { %v912_v38 = vpop.f32.mrf.mxu1 }
 0x106   : > { %v1586_v39 = vpop.f32.mrf.mxu1 }
 0x108   : > { %v915_v40 = vpop.f32.mrf.mxu1 }
 0x109   : > { %v928_v41 = vpack.c.bf16 %v915_v40, %v912_v38 }
 0x10a   : > { %v1587_v42 = vpop.f32.mrf.mxu1 }
 0x10b   : > { %1197 = vmatmul.mubr.bf16.vlgmr.msra.gmra.mxu0 %v928_v41  ;;  %1154 = vmatmul.mubr.bf16.vlgmr.msra.gmra.mxu1 %v928_v41 }
 0x117   : > { %v790_v2 = vpop.f32.mrf.mxu0 }
 0x119   : > { %v792_v4 = vpop.f32.mrf.mxu0 }
 0x11b   : > { %v794_v7 = vpop.f32.mrf.mxu0 }
 0x11d   : > { %v796_v9 = vpop.f32.mrf.mxu0 }
 0x185   : > { %v498_v45 = vpop.xlane.xlu0 %497 }
 0x186   : > { %v502_v46 = vsub.f32 %v2100_v43, %v498_v45 }
 0x188   : > { %v504_v47 = vmul.f32 1.442695, %v502_v46 }
 0x189   : > { %v501_v48 = vpop.xlane.xlu0 %500 }
 0x18a   : > { %1765 = vpow2.f32 %v504_v47  ;;  %v503_v49 = vsub.f32 %v2102_v44, %v501_v48 }
 0x18c   : > { %v506_v50 = vmul.f32 1.442695, %v503_v49 }
 0x18e   : > { %1767 = vpow2.f32 %v506_v50 }
 0x197   : > { %v1766_v51 = vpop.eup %1765 }
 0x198   : > { %v508_v52 = vsel %vm495_vm2, %v1766_v51, 0.0 }
 0x199   : > { %509 = vadd.xlane.f32.xlu1 %v508_v52 }
 0x19b   : > { %v1768_v53 = vpop.eup %1767 }
 0x19c   : > { %v511_v54 = vsel %vm495_vm2, %v1768_v53, 0.0 }
 0x19d   : > { %512 = vadd.xlane.f32.xlu1 %v511_v54 }
 0x1cb   : > { %v1155_v10 = vpop.f32.mrf.mxu1 }
 0x1cd   : > { %v1157_v13 = vpop.f32.mrf.mxu1 }
 0x1cf   : > { %v1159_v16 = vpop.f32.mrf.mxu1 }
 0x1d1   : > { %v1161_v20 = vpop.f32.mrf.mxu1 }
 0x222   : > { %v510_v56 = vpop.xlane.xlu1 %509 }
 0x223   : > { %1769 = vrcp.f32 %v510_v56 }
 0x226   : > { %v513_v43 = vpop.xlane.xlu1 %512 }
 0x227   : > { %1771 = vrcp.f32 %v513_v43 }
 0x230   : > { %v1770_v57 = vpop.eup %1769 }
 0x231   : > { %v516_v58 = vmul.f32 %v1770_v57, %v1766_v51 }
 0x233   : > { %518 = vst.msk [vmem:[#allocation3] sm:$0xff] %vm495_vm2, %v516_v58 }
 0x234   : > { %v1772_v44 = vpop.eup %1771 }
 0x235   : > { %v517_v59 = vmul.f32 %v1772_v44, %v1768_v53 }
 0x237   : > { %828 = vperm.xlu0 %1653, %v517_v59   ;;  %519 = vst.msk [vmem:[#allocation3 + $0x8] sm:$0xff] %vm495_vm2, %v517_v59  ;;  %806 = vperm.xlu1 %1651, %v517_v59  }
 0x23a   : > { %v1207_v63 = vld [vmem:[#allocation3] sm:$0xff] }
 0x23b   : > { %1655 = vset.pattern.permute.xlu0 %v1851_v23  ;;  %1652 = vset.pattern.permute.xlu1 %v1855_v60 }
 0x23c   : > { %801 = vperm.xlu0 %1655, %v516_v58   ;;  %816 = vperm.xlu1 %1652, %v517_v59  }
 0x23e   : > { %v1208_v62 = vld [vmem:[#allocation3 + $0x8] sm:$0xff] }
 0x240   : > { %1658 = vset.pattern.permute.xlu0 %v1856_v61  ;;  %1654 = vset.pattern.permute.xlu1 %v1856_v61 }
 0x241   : > { %836 = vperm.xlu0 %1658, %v516_v58   ;;  %840 = vperm.xlu1 %1654, %v517_v59  }
 0x245   : > { %1656 = vset.pattern.permute.xlu1 %v1855_v60  ;;  %1250 = vperm.xlu0 %1658, %v1208_v62  }
 0x246   : > { %812 = vperm.xlu1 %1656, %v516_v58  }
 0x24a   : > { %1657 = vset.pattern.permute.xlu1 %v1854_v55 }
 0x24b   : > { %824 = vperm.xlu1 %1657, %v516_v58  }
 0x24f   : > { %1659 = vset.pattern.permute.xlu1 %v1851_v23 }
 0x250   : > { %1216 = vperm.xlu1 %1659, %v1208_v62  }
 0x254   : > { %1660 = vset.pattern.permute.xlu1 %v1855_v60 }
 0x255   : > { %1226 = vperm.xlu1 %1660, %v1208_v62  }
 0x259   : > { %1661 = vset.pattern.permute.xlu1 %v1854_v55 }
 0x25a   : > { %1238 = vperm.xlu1 %1661, %v1208_v62  }
 0x25e   : > { %1662 = vset.pattern.permute.xlu1 %v1851_v23  ;;  %v1198_v23 = vpop.f32.mrf.mxu0 }
 0x25f   : > { %1211 = vperm.xlu1 %1662, %v1207_v63  }
 0x260   : > { %v1200_v15 = vpop.f32.mrf.mxu0 }
 0x262   : > { %v1202_v22 = vpop.f32.mrf.mxu0 }
 0x263   : > { %1663 = vset.pattern.permute.xlu1 %v1855_v60 }
 0x264   : > { %1222 = vperm.xlu1 %1663, %v1207_v63   ;;  %v1204_v28 = vpop.f32.mrf.mxu0 }
 0x268   : > { %1664 = vset.pattern.permute.xlu1 %v1854_v55 }
 0x269   : > { %1234 = vperm.xlu1 %1664, %v1207_v63  }
 0x26d   : > { %1665 = vset.pattern.permute.xlu1 %v1856_v61 }
 0x26e   : > { %1246 = vperm.xlu1 %1665, %v1207_v63  }
 0x2b2   : > { %v807_v0 = vpop.permute.xlu1 %806  ;;  %v829_v8 = vpop.permute.xlu0 %828 }
 0x2b3   : > { %v810_v21 = vmul.f32 %v807_v0, %v2258_v36  ;;  %v832_v27 = vmul.f32 %v829_v8, %v794_v7 }
 0x2b7   : > { %v817_v1 = vpop.permute.xlu1 %816  ;;  %v802_v12 = vpop.permute.xlu0 %801 }
 0x2b8   : > { %v820_v18 = vmul.f32 %v817_v1, %v2260_v37  ;;  %v809_v50 = vmul.f32 %v802_v12, %v2254_v34 }
 0x2ba   : > { %v822_v25 = vadd.f32 %v820_v18, %v810_v21 }
 0x2bc   : > { %v841_v3 = vpop.permute.xlu1 %840  ;;  %v837_v19 = vpop.permute.xlu0 %836  ;;  %v834_v32 = vadd.f32 %v832_v27, %v822_v25 }
 0x2bd   : > { %v844_v33 = vmul.f32 %v841_v3, %v796_v9 }
 0x2bf   : > { %v846_v41 = vadd.f32 %v844_v33, %v834_v32 }
 0x2c0   : > { %v1251_v30 = vpop.permute.xlu0 %1250 }
 0x2c1   : > { %v813_v5 = vpop.permute.xlu1 %812  ;;  %v1254_v37 = vmul.f32 %v1251_v30, %v1204_v28 }
 0x2c2   : > { %v819_v49 = vmul.f32 %v813_v5, %v2256_v35 }
 0x2c4   : > { %v821_v54 = vadd.f32 %v819_v49, %v809_v50 }
 0x2c6   : > { %v825_v11 = vpop.permute.xlu1 %824 }
 0x2c7   : > { %v831_v51 = vmul.f32 %v825_v11, %v790_v2 }
 0x2c9   : > { %v833_v43 = vadd.f32 %v831_v51, %v821_v54 }
 0x2cb   : > { %v1217_v14 = vpop.permute.xlu1 %1216 }
 0x2cc   : > { %v1220_v29 = vmul.f32 %v1217_v14, %v1159_v16 }
 0x2d0   : > { %v1227_v24 = vpop.permute.xlu1 %1226 }
 0x2d1   : > { %v1230_v26 = vmul.f32 %v1227_v24, %v1161_v20 }
 0x2d3   : > { %v1232_v38 = vadd.f32 %v1230_v26, %v1220_v29 }
 0x2d5   : > { %v1239_v31 = vpop.permute.xlu1 %1238 }
 0x2d6   : > { %v1242_v39 = vmul.f32 %v1239_v31, %v1202_v22 }
 0x2d8   : > { %v1244_v40 = vadd.f32 %v1242_v39, %v1232_v38 }
 0x2da   : > { %v1256_v36 = vadd.f32 %v1254_v37, %v1244_v40  ;;  %v1212_v42 = vpop.permute.xlu1 %1211 }
 0x2db   : > { %v1219_v55 = vmul.f32 %v1212_v42, %v1155_v10 }
 0x2dc   : > { %v1260_v45 = vadd.f32 %v1256_v36, %v846_v41 }
 0x2de   : > { %v1264_v46 = vadd.f32 %v1260_v45, %v2030_v17  ;;  %v843_v17 = vmul.f32 %v837_v19, %v792_v4 }
 0x2df   : > { %v1223_v47 = vpop.permute.xlu1 %1222 }
 0x2e0   : > { %v1266_v48 = vmax.f32 %v1264_v46, 0.0  ;;  %v1229_v52 = vmul.f32 %v1223_v47, %v1157_v13  ;;  %v845_v35 = vadd.f32 %v843_v17, %v833_v43 }
 0x2e2   : > { %1268 = vst [vmem:[%s352_s11 + $0x8] sm:$0xff] %v1266_v48  ;;  %v1231_v57 = vadd.f32 %v1229_v52, %v1219_v55 }
 0x2e4   : > { %v1235_v53 = vpop.permute.xlu1 %1234 }
 0x2e5   : > { %v1241_v56 = vmul.f32 %v1235_v53, %v1198_v23 }
 0x2e7   : > { %v1243_v44 = vadd.f32 %v1241_v56, %v1231_v57 }
 0x2e9   : > { %v1247_v58 = vpop.permute.xlu1 %1246 }
 0x2ea   : > { %v1253_v59 = vmul.f32 %v1247_v58, %v1200_v15 }
 0x2ec   : > { %v1255_v60 = vadd.f32 %v1253_v59, %v1243_v44 }
 0x2ee   : > { %v1259_v61 = vadd.f32 %v1255_v60, %v845_v35 }
 0x2f0   : > { %v1263_v34 = vadd.f32 %v1259_v61, %v1996_v6 }
 0x2f2   : > { %v1265_v62 = vmax.f32 %v1263_v34, 0.0 }
 0x2f4   : > { %1267 = vst [vmem:[%s352_s11] sm:$0xff] %v1265_v62  ;;  %v1522_v63 = vpack.c.bf16 %v1266_v48, %v1265_v62 }
 0x2f5   : > { %1786 = shalt.err (!%p1783_p5)
}
 0x2f6   : > { %s1787_s23 = scalar_lea.hbm %s2284_s19, 256  ;;  %s1791_s11 = scalar_lea.hbm %s2350_s7, 512 }
 0x2f7   : > { %p1788_p6 = scmp.ne.s32.totalorder %s2284_s19, %s1787_s23  ;;  %p1792_p10 = scmp.lt.s32.totalorder %s2284_s19, %s2350_s7 }
 0x2f8   : > { %p1793_p11 = scmp.lt.s32.totalorder %s1791_s11, %s1787_s23 }
 0x2f9   : > { %p1789_p7 = pnand %p1788_p6, %p1945_p4 }
 0x2fa   : > { %p1794_p12 = por %p1793_p11, %p1792_p10 }
 0x2fb   : > { %p1790_p9 = pneg %p1789_p7 }
 0x2fd   : > { %p1795_p13 = pnand %p1794_p12, %p1790_p9 }
 0x2ff   : > { %1798 = shalt.err (!%p1795_p13)
}
 0x300   : > { %s1858_s13 = smov 128   ;;  %s1859_s22 = smov 8   ;;  %1523 = vst [vmem:[%s2293_s25] sm:$0xff] %v1522_v63  }
 0x301   : > { %1588 = dma.vmem_to_hbm [thread:$0]  (%p1945_p4), %s2286_s12, 256, %s2284_s19, %s2297_s30, %s1858_s13, %s1858_s13, %s1859_s22  }
 0x302 PF: > { %p1594_p0 = scmp.ge.s32.totalorder %s1849_s10, 2  ;;  %s1317_s14 = sand.u32 1, %s1829_s27  }
 0x303   : > { %s1318_s20 = scalar_lea.sflag [#allocation6], %s1317_s14 }
 0x304   : > { %p1591_p1 = pnand %p1594_p0, %p1952_p8 }
 0x306   : > { %p1592_p2 = pneg %p1591_p1 }
 0x308   : > { %1824 = dma.done.wait (%p1592_p2), %s1318_s20, 256  }
 0x309   : > { %1826 = vsyncadd (%p1592_p2), %s1318_s20, 4294967040  ;;  %s22_s10 = sadd.s32 1, %s1849_s10   ;;  %s2356_s15 = sld [smem:[#allocation8_spill]] }
 0x30a   : > { %p19_p3 = scmp.ge.s32.totalorder %s22_s10, 4   ;;  %s2357_s27 = smov %s1833_s28 }
 0x30b   : > { %s2358_s28 = smov %s1837_s29  ;;  %s2359_s29 = smov %s1958_s18 }
 0x30c   : > { %s2360_s30 = smov %s1845_s9  ;;  %21 = sbr.rel (!%p19_p3) target bundleno = 4 (0x4), region = 109 }
 0x30f   : > { %s2361_s9 = smov %s2356_s15 }
 0x311   :  { %1331 = vsyncpa [#allocation6], 1 }
 0x312   :  { %1333 = vsyncpa [#allocation6 + $0x1], 1 }

// kernel: canet_forward.5
= control target key start
LH: loop header
LB: loop body
LE: loop exit
PB: predicated region body
PF: predicated region fallthrough
CT: control target
= control target key end

     0   :  { %s1795_s27 = smov 0   ;;  %s1797_s28 = smov 0   ;;  %s2150_s0 = inlined_call_operand.vmem [shape: bf16[32,32], index: 0, kind: input, shape index: {}]   ;;  %s2151_s1 = inlined_call_operand.vmem [shape: bf16[32,128], index: 1, kind: input, shape index: {}]   ;;  %s2152_s2 = inlined_call_operand.vmem [shape: f32[32,128], index: 2, kind: input, shape index: {}]   ;;  %s2153_s3 = inlined_call_operand.vmem [shape: f32[128,4], index: 3, kind: input, shape index: {}]   ;;  %s2154_s4 = inlined_call_operand.vmem [shape: f32[1,4], index: 4, kind: input, shape index: {}]   ;;  %s2155_s5 = inlined_call_operand.vmem [shape: bf16[128,512], index: 5, kind: input, shape index: {}]   ;;  %s2156_s6 = inlined_call_operand.vmem [shape: bf16[128,512], index: 6, kind: input, shape index: {}]   ;;  %s2157_s7 = inlined_call_operand.vmem [shape: f32[32,128], index: 7, kind: output, shape index: {0}]   ;;  %s2158_s8 = inlined_call_operand.vmem [shape: bf16[32,128], index: 8, kind: output, shape index: {1}]  }
   0x1   :  { %s1799_s29 = smov 0  }
   0x2 LB: > { %s31_s30 = sadd.s32 1, %s1738_s28  ;;  %p1415_p0 = scmp.ge.s32.totalorder %s1742_s29, 1  ;;  %s1742_s29 = sphi %s1799_s29, %s19_s29   ;;  %s1738_s28 = sphi %s1797_s28, %s2160_s28   ;;  %s1734_s27 = sphi %s1795_s27, %s2159_s27  }
   0x3   : > { %p33_p1 = scmp.ge.s32.totalorder %s31_s30, 2  ;;  %p305_p2 = scmp.lt.s32.totalorder %s1742_s29, 3 }
   0x5   : > { %s2162_s30 = smov (%p33_p1, %s31_s30), 0  ;;  %p306_p3 = pnand %p1415_p0, %p305_p2 }
   0x6   : > { %s1416_s13 = sshll.u32 (!%p306_p3), %s1734_s27, 1 }
   0x7   : > { %309 = sbr.rel (%p306_p3) target bundleno = 750 (0x2ee), region = 48  ;;  %p358_p4 = scmp.lt.s32.totalorder (!%p306_p3), %s1416_s13, 3 }
   0xc   : > { %v414_v0 = vld [vmem:[%s2153_s3 + $0x78] sm:$0xff]  ;;  %v413_v1 = vld [vmem:[%s2153_s3 + $0x70] sm:$0xff]  ;;  %v412_v2 = vld [vmem:[%s2153_s3 + $0x68] sm:$0xff]  ;;  %s2164_s13 = smov (!%p358_p4, %s1416_s13), 3  ;;  %v1744_v23 = vmov 0   ;;  %v1745_v37 = vmov 0.0  }
   0xd   : > { %1525 = vmatprep.subr.mxu0 %v414_v0  ;;  %v411_v3 = vld [vmem:[%s2153_s3 + $0x60] sm:$0xff]  ;;  %v410_v4 = vld [vmem:[%s2153_s3 + $0x58] sm:$0xff]  ;;  %s1417_s20 = sshll.u32 %s2164_s13, 2  ;;  %s1419_s21 = sshll.u32 %s2164_s13, 3  ;;  %v409_v5 = vld [vmem:[%s2153_s3 + $0x50] sm:$0xff]  ;;  %747 = vmatprep.mubr.bf16.mxu1 %v1744_v23  ;;  %vm1746_vm0 = vmmov 0  }
   0xe   : > { %1526 = vmatpush3.msra.mxu0 %v414_v0  ;;  %s1837_s24 = scalar_lea.vmem %s2150_s0, %s1417_s20  ;;  %s1844_s27 = scalar_lea.vmem %s2152_s2, %s1419_s21  ;;  %v408_v7 = vld [vmem:[%s2153_s3 + $0x48] sm:$0xff]  ;;  %v407_v8 = vld [vmem:[%s2153_s3 + $0x40] sm:$0xff]  ;;  %v406_v9 = vld [vmem:[%s2153_s3 + $0x38] sm:$0xff]  ;;  %1598 = vset.pattern.permute.xlu1 %v1744_v23  ;;  %vm876_vm1 = vcmask 261120   ;;  %vm497_vm2 = vcmask 31744  }
   0xf   : > { %1527 = vmatprep.subr.mxu0 %v413_v1  ;;  %v1850_v6 = vld [vmem:[%s1844_s27] sm:$0xff]  ;;  %v405_v10 = vld [vmem:[%s2153_s3 + $0x30] sm:$0xff]  ;;  %v404_v11 = vld [vmem:[%s2153_s3 + $0x28] sm:$0xff]  ;;  %s382_s11 = scalar_lea.vmem %s2157_s7, %s1419_s21  ;;  %s388_s15 = scalar_lea.vmem %s2158_s8, %s1417_s20 }
  0x10   : > { %1528 = vmatpush3.msra.mxu0 %v413_v1  ;;  %1557 = vmatprep.mubr.f32.mxu0 %v1850_v6  ;;  %v403_v12 = vld [vmem:[%s2153_s3 + $0x20] sm:$0xff]  ;;  %v402_v13 = vld [vmem:[%s2153_s3 + $0x18] sm:$0xff]  ;;  %v401_v14 = vld [vmem:[%s2153_s3 + $0x10] sm:$0xff] }
  0x11   : > { %1529 = vmatprep.subr.mxu0 %v412_v2  ;;  %v400_v15 = vld [vmem:[%s2153_s3 + $0x8] sm:$0xff]  ;;  %v399_v16 = vld [vmem:[%s2153_s3] sm:$0xff] }
  0x12   : > { %1530 = vmatpush3.msra.mxu0 %v412_v2  ;;  %v1884_v17 = vld [vmem:[%s1844_s27 + $0x8] sm:$0xff]  ;;  %v1613_v18 = vld [vmem:[%s2156_s6 + $0xe4] ss:$16 sps:$4 sm:$0xff]   ;;  %v1615_v19 = vld [vmem:[%s2156_s6 + $0xe0] ss:$16 sps:$4 sm:$0xff]  }
  0x13   : > { %1531 = vmatprep.subr.mxu0 %v411_v3  ;;  %v1616_v20 = vld [vmem:[%s2156_s6 + $0xc4] ss:$16 sps:$4 sm:$0xff]   ;;  %715 = vmatprep.subr.bf16.mxu1 %v1613_v18  ;;  %v1618_v21 = vld [vmem:[%s2156_s6 + $0xc0] ss:$16 sps:$4 sm:$0xff]   ;;  %v1940_v35 = vpack.c.bf16 %v1884_v17, %v1850_v6  ;;  %v1637_v36 = vld [vmem:[%s2151_s1 + $0x8] sm:$0xff]  }
  0x14   : > { %1532 = vmatpush3.msra.mxu0 %v411_v3  ;;  %716 = vmatpush1.bf16.msra.mxu1 %v1615_v19  ;;  %v1619_v22 = vld [vmem:[%s2156_s6 + $0xa4] ss:$16 sps:$4 sm:$0xff]   ;;  %v1621_v24 = vld [vmem:[%s2156_s6 + $0xa0] ss:$16 sps:$4 sm:$0xff]   ;;  %v1640_v47 = vld [vmem:[%s2156_s6 + $0xe8] ss:$16 sps:$4 sm:$0xff]  }
  0x15   : > { %1533 = vmatprep.subr.mxu0 %v410_v4  ;;  %717 = vmatprep.subr.bf16.mxu1 %v1616_v20  ;;  %v1622_v25 = vld [vmem:[%s2156_s6 + $0x84] ss:$16 sps:$4 sm:$0xff]   ;;  %v1624_v26 = vld [vmem:[%s2156_s6 + $0x80] ss:$16 sps:$4 sm:$0xff]   ;;  %v1642_v48 = vld [vmem:[%s2156_s6 + $0xec] ss:$16 sps:$4 sm:$0xff]  }
  0x16   : > { %1534 = vmatpush3.msra.mxu0 %v410_v4  ;;  %v1625_v27 = vld [vmem:[%s2156_s6 + $0x64] ss:$16 sps:$4 sm:$0xff]   ;;  %v1627_v28 = vld [vmem:[%s2156_s6 + $0x60] ss:$16 sps:$4 sm:$0xff]   ;;  %v1645_v49 = vld [vmem:[%s2156_s6 + $0xcc] ss:$16 sps:$4 sm:$0xff]  }
  0x17   : > { %1535 = vmatprep.subr.mxu0 %v409_v5  ;;  %v1628_v29 = vld [vmem:[%s2156_s6 + $0x44] ss:$16 sps:$4 sm:$0xff]   ;;  %v1630_v30 = vld [vmem:[%s2156_s6 + $0x40] ss:$16 sps:$4 sm:$0xff]   ;;  %v1643_v50 = vld [vmem:[%s2156_s6 + $0xc8] ss:$16 sps:$4 sm:$0xff]  }
  0x18   : > { %1536 = vmatpush3.msra.mxu0 %v409_v5  ;;  %718 = vmatpush1.bf16.msra.mxu1 %v1618_v21  ;;  %v1631_v31 = vld [vmem:[%s2156_s6 + $0x24] ss:$16 sps:$4 sm:$0xff]   ;;  %v1633_v32 = vld [vmem:[%s2156_s6 + $0x20] ss:$16 sps:$4 sm:$0xff]   ;;  %v1648_v51 = vld [vmem:[%s2156_s6 + $0xac] ss:$16 sps:$4 sm:$0xff]  }
  0x19   : > { %1537 = vmatprep.subr.mxu0 %v408_v7  ;;  %719 = vmatprep.subr.bf16.mxu1 %v1619_v22  ;;  %v1634_v33 = vld [vmem:[%s2156_s6 + $0x4] ss:$16 sps:$4 sm:$0xff]   ;;  %v1636_v34 = vld [vmem:[%s2156_s6] ss:$16 sps:$4 sm:$0xff]   ;;  %v1646_v52 = vld [vmem:[%s2156_s6 + $0xa8] ss:$16 sps:$4 sm:$0xff]  }
  0x1a   : > { %1538 = vmatpush3.msra.mxu0 %v408_v7  ;;  %v1638_v38 = vld [vmem:[%s2151_s1] sm:$0xff]   ;;  %v1651_v53 = vld [vmem:[%s2156_s6 + $0x8c] ss:$16 sps:$4 sm:$0xff]   ;;  %v1649_v57 = vld [vmem:[%s2156_s6 + $0x88] ss:$16 sps:$4 sm:$0xff]  }
  0x1b   : > { %1539 = vmatprep.subr.mxu0 %v407_v8  ;;  %v1639_v39 = vld [vmem:[%s1837_s24] sm:$0xff]   ;;  %v1654_v59 = vld [vmem:[%s2156_s6 + $0x6c] ss:$16 sps:$4 sm:$0xff]   ;;  %v1652_v61 = vld [vmem:[%s2156_s6 + $0x68] ss:$16 sps:$4 sm:$0xff]  }
  0x1c   : > { %1540 = vmatpush3.msra.mxu0 %v407_v8  ;;  %720 = vmatpush1.bf16.msra.mxu1 %v1621_v24  ;;  %v1424_v41 = vld [vmem:[%s2154_s4] ss:$0 sm:$0xff]  ;;  %v1678_v55 = vld [vmem:[%s2155_s5 + $0xe4] ss:$16 sps:$4 sm:$0xff]   ;;  %v1657_v63 = vld [vmem:[%s2156_s6 + $0x4c] ss:$16 sps:$4 sm:$0xff]  }
  0x1d   : > { %1541 = vmatprep.subr.mxu0 %v406_v9  ;;  %721 = vmatprep.subr.bf16.mxu1 %v1622_v25  ;;  %v1676_v54 = vld [vmem:[%s2155_s5 + $0xe0] ss:$16 sps:$4 sm:$0xff]   ;;  %v1684_v56 = vld [vmem:[%s2155_s5 + $0xc4] ss:$16 sps:$4 sm:$0xff]   ;;  %v1655_v1 = vld [vmem:[%s2156_s6 + $0x48] ss:$16 sps:$4 sm:$0xff]  }
  0x1e   : > { %1542 = vmatpush3.msra.mxu0 %v406_v9  ;;  %v1682_v58 = vld [vmem:[%s2155_s5 + $0xc0] ss:$16 sps:$4 sm:$0xff]   ;;  %v1690_v60 = vld [vmem:[%s2155_s5 + $0xa4] ss:$16 sps:$4 sm:$0xff]   ;;  %v1660_v3 = vld [vmem:[%s2156_s6 + $0x2c] ss:$16 sps:$4 sm:$0xff]  }
  0x1f   : > { %1543 = vmatprep.subr.mxu0 %v405_v10  ;;  %v1688_v62 = vld [vmem:[%s2155_s5 + $0xa0] ss:$16 sps:$4 sm:$0xff]   ;;  %v1696_v0 = vld [vmem:[%s2155_s5 + $0x84] ss:$16 sps:$4 sm:$0xff]   ;;  %v1658_v5 = vld [vmem:[%s2156_s6 + $0x28] ss:$16 sps:$4 sm:$0xff]  }
  0x20   : > { %1544 = vmatpush3.msra.mxu0 %v405_v10  ;;  %722 = vmatpush1.bf16.msra.mxu1 %v1624_v26  ;;  %v1694_v2 = vld [vmem:[%s2155_s5 + $0x80] ss:$16 sps:$4 sm:$0xff]   ;;  %v1702_v4 = vld [vmem:[%s2155_s5 + $0x64] ss:$16 sps:$4 sm:$0xff]   ;;  %v1663_v8 = vld [vmem:[%s2156_s6 + $0xc] ss:$16 sps:$4 sm:$0xff]  }
  0x21   : > { %1545 = vmatprep.subr.mxu0 %v404_v11  ;;  %723 = vmatprep.subr.bf16.mxu1 %v1625_v27  ;;  %v1700_v7 = vld [vmem:[%s2155_s5 + $0x60] ss:$16 sps:$4 sm:$0xff]   ;;  %v1705_v9 = vld [vmem:[%s2155_s5 + $0x44] ss:$16 sps:$4 sm:$0xff]   ;;  %v1661_v10 = vld [vmem:[%s2156_s6 + $0x8] ss:$16 sps:$4 sm:$0xff]  }
  0x22   : > { %1546 = vmatpush3.msra.mxu0 %v404_v11  ;;  %v1703_v11 = vld [vmem:[%s2155_s5 + $0x40] ss:$16 sps:$4 sm:$0xff]   ;;  %v1711_v18 = vld [vmem:[%s2155_s5 + $0x4] ss:$16 sps:$4 sm:$0xff]   ;;  %v1667_v19 = vld [vmem:[%s2155_s5 + $0xc8] ss:$16 sps:$4 sm:$0xff]  }
  0x23   : > { %1547 = vmatprep.subr.mxu0 %v403_v12  ;;  %v1672_v20 = vld [vmem:[%s2155_s5 + $0xac] ss:$16 sps:$4 sm:$0xff]   ;;  %v1709_v21 = vld [vmem:[%s2155_s5] ss:$16 sps:$4 sm:$0xff]   ;;  %v1670_v22 = vld [vmem:[%s2155_s5 + $0xa8] ss:$16 sps:$4 sm:$0xff]  }
  0x24   : > { %1548 = vmatpush3.msra.mxu0 %v403_v12  ;;  %724 = vmatpush1.bf16.msra.mxu1 %v1627_v28  ;;  %v1666_v12 = vld [vmem:[%s2155_s5 + $0xec] ss:$16 sps:$4 sm:$0xff]   ;;  %v1673_v25 = vld [vmem:[%s2155_s5 + $0x88] ss:$16 sps:$4 sm:$0xff]  }
  0x25   : > { %1549 = vmatprep.subr.mxu0 %v402_v13  ;;  %725 = vmatprep.subr.bf16.mxu1 %v1628_v29  ;;  %v1675_v24 = vld [vmem:[%s2155_s5 + $0x8c] ss:$16 sps:$4 sm:$0xff]   ;;  %v1679_v27 = vld [vmem:[%s2155_s5 + $0x68] ss:$16 sps:$4 sm:$0xff]  }
  0x26   : > { %1550 = vmatpush3.msra.mxu0 %v402_v13  ;;  %v1708_v13 = vld [vmem:[%s2155_s5 + $0x24] ss:$16 sps:$4 sm:$0xff]   ;;  %v1681_v26 = vld [vmem:[%s2155_s5 + $0x6c] ss:$16 sps:$4 sm:$0xff]   ;;  %v1685_v29 = vld [vmem:[%s2155_s5 + $0x48] ss:$16 sps:$4 sm:$0xff]  }
  0x27   : > { %1551 = vmatprep.subr.mxu0 %v401_v14  ;;  %v1687_v28 = vld [vmem:[%s2155_s5 + $0x4c] ss:$16 sps:$4 sm:$0xff]  }
  0x28   : > { %1552 = vmatpush3.msra.mxu0 %v401_v14  ;;  %726 = vmatpush1.bf16.msra.mxu1 %v1630_v30  ;;  %v1664_v14 = vld [vmem:[%s2155_s5 + $0xe8] ss:$16 sps:$4 sm:$0xff]   ;;  %v1693_v30 = vld [vmem:[%s2155_s5 + $0x2c] ss:$16 sps:$4 sm:$0xff]  }
  0x29   : > { %1553 = vmatprep.subr.mxu0 %v400_v15  ;;  %727 = vmatprep.subr.bf16.mxu1 %v1631_v31  ;;  %v1691_v31 = vld [vmem:[%s2155_s5 + $0x28] ss:$16 sps:$4 sm:$0xff]  }
  0x2a   : > { %1554 = vmatpush3.msra.mxu0 %v400_v15  ;;  %v1669_v15 = vld [vmem:[%s2155_s5 + $0xcc] ss:$16 sps:$4 sm:$0xff]  }
  0x2b   : > { %1555 = vmatprep.subr.mxu0 %v399_v16 }
  0x2c   : > { %1556 = vmatpush3.msra.mxu0 %v399_v16  ;;  %728 = vmatpush1.bf16.msra.mxu1 %v1633_v32  ;;  %v1706_v16 = vld [vmem:[%s2155_s5 + $0x20] ss:$16 sps:$4 sm:$0xff]   ;;  %v1699_v32 = vld [vmem:[%s2155_s5 + $0xc] ss:$16 sps:$4 sm:$0xff]  }
  0x2d   : > { %1558 = vmatmul.mubr.f32.vlgmr.msra.gmra.mxu0 %v1884_v17  ;;  %729 = vmatprep.subr.bf16.mxu1 %v1634_v33  ;;  %v1697_v33 = vld [vmem:[%s2155_s5 + $0x8] ss:$16 sps:$4 sm:$0xff]  }
  0x2e   : > { %790 = vmatprep.mubr.bf16.mxu0 %v1744_v23  ;;  %758 = vmatprep.subr.bf16.mxu0 %v1642_v48 }
  0x2f   : > { %759 = vmatpush1.bf16.msra.mxu0 %v1640_v47 }
  0x30   : > { %730 = vmatpush1.bf16.msra.mxu1 %v1636_v34  ;;  %760 = vmatprep.subr.bf16.mxu0 %v1645_v49 }
  0x31   : > { %1560 = vmatprep.subr.bf16.mxu1 %v1745_v37 }
  0x33   : > { %748 = vmatmul.mubr.bf16.vlgmr.msra.gmra.mxu1 %v1940_v35  ;;  %761 = vmatpush1.bf16.msra.mxu0 %v1643_v50 }
  0x34   : > { %1561 = vmatpush3.bf16.msra.mxu1 %v1637_v36  ;;  %1564 = vmatprep.mubr.msk.bf16.mxu1 %vm1746_vm0, %v1745_v37 }
  0x35   : > { %1562 = vmatprep.subr.bf16.mxu1 %v1745_v37  ;;  %762 = vmatprep.subr.bf16.mxu0 %v1648_v51 }
  0x37   : > { %763 = vmatpush1.bf16.msra.mxu0 %v1646_v52 }
  0x38   : > { %1563 = vmatpush3.bf16.msra.mxu1 %v1638_v38  ;;  %764 = vmatprep.subr.bf16.mxu0 %v1651_v53 }
  0x39   : > { %1123 = vmatprep.subr.bf16.mxu1 %v1678_v55  ;;  %v1747_v55 = vmov 2  }
  0x3a   : > { %1600 = vset.pattern.permute.xlu0 %v1747_v55 }
  0x3b   : > { %1565 = vmatmul.mubr.msk.bf16.vlgmr.msra.gmra.mxu1 %vm876_vm1, %v1639_v39  ;;  %765 = vmatpush1.bf16.msra.mxu0 %v1649_v57 }
  0x3c   : > { %1155 = vmatprep.mubr.bf16.mxu1 %v1744_v23  ;;  %1124 = vmatpush1.bf16.msra.mxu1 %v1676_v54 }
  0x3d   : > { %1125 = vmatprep.subr.bf16.mxu1 %v1684_v56  ;;  %766 = vmatprep.subr.bf16.mxu0 %v1654_v59 }
  0x3f   : > { %767 = vmatpush1.bf16.msra.mxu0 %v1652_v61  ;;  %v1749_v61 = vmov 3  }
  0x40   : > { %1126 = vmatpush1.bf16.msra.mxu1 %v1682_v58  ;;  %768 = vmatprep.subr.bf16.mxu0 %v1657_v63 }
  0x41   : > { %1127 = vmatprep.subr.bf16.mxu1 %v1690_v60  ;;  %v1748_v60 = vmov 1  }
  0x43   : > { %769 = vmatpush1.bf16.msra.mxu0 %v1655_v1 }
  0x44   : > { %1128 = vmatpush1.bf16.msra.mxu1 %v1688_v62  ;;  %770 = vmatprep.subr.bf16.mxu0 %v1660_v3 }
  0x45   : > { %1129 = vmatprep.subr.bf16.mxu1 %v1696_v0 }
  0x47   : > { %771 = vmatpush1.bf16.msra.mxu0 %v1658_v5 }
  0x48   : > { %1130 = vmatpush1.bf16.msra.mxu1 %v1694_v2  ;;  %772 = vmatprep.subr.bf16.mxu0 %v1663_v8 }
  0x49   : > { %1131 = vmatprep.subr.bf16.mxu1 %v1702_v4 }
  0x4b   : > { %773 = vmatpush1.bf16.msra.mxu0 %v1661_v10 }
  0x4c   : > { %1132 = vmatpush1.bf16.msra.mxu1 %v1700_v7  ;;  %1166 = vmatprep.subr.bf16.mxu0 %v1666_v12 }
  0x4d   : > { %1133 = vmatprep.subr.bf16.mxu1 %v1705_v9 }
  0x4e   : > { %791 = vmatmul.mubr.bf16.vlgmr.msra.gmra.mxu0 %v1940_v35 }
  0x4f   : > { %1167 = vmatpush1.bf16.msra.mxu0 %v1664_v14  ;;  %1198 = vmatprep.mubr.bf16.mxu0 %v1744_v23 }
  0x50   : > { %1134 = vmatpush1.bf16.msra.mxu1 %v1703_v11  ;;  %1168 = vmatprep.subr.bf16.mxu0 %v1669_v15 }
  0x51   : > { %1135 = vmatprep.subr.bf16.mxu1 %v1708_v13 }
  0x53   : > { %1169 = vmatpush1.bf16.msra.mxu0 %v1667_v19 }
  0x54   : > { %1136 = vmatpush1.bf16.msra.mxu1 %v1706_v16  ;;  %1170 = vmatprep.subr.bf16.mxu0 %v1672_v20 }
  0x55   : > { %1137 = vmatprep.subr.bf16.mxu1 %v1711_v18 }
  0x57   : > { %1171 = vmatpush1.bf16.msra.mxu0 %v1670_v22 }
  0x58   : > { %1138 = vmatpush1.bf16.msra.mxu1 %v1709_v21  ;;  %1172 = vmatprep.subr.bf16.mxu0 %v1675_v24 }
  0x5b   : > { %1173 = vmatpush1.bf16.msra.mxu0 %v1673_v25 }
  0x5c   : > { %1174 = vmatprep.subr.bf16.mxu0 %v1681_v26 }
  0x5f   : > { %1175 = vmatpush1.bf16.msra.mxu0 %v1679_v27 }
  0x60   : > { %1176 = vmatprep.subr.bf16.mxu0 %v1687_v28 }
  0x63   : > { %1177 = vmatpush1.bf16.msra.mxu0 %v1685_v29 }
  0x64   : > { %1178 = vmatprep.subr.bf16.mxu0 %v1693_v30 }
  0x67   : > { %1179 = vmatpush1.bf16.msra.mxu0 %v1691_v31 }
  0x68   : > { %1180 = vmatprep.subr.bf16.mxu0 %v1699_v32 }
  0x6b   : > { %1181 = vmatpush1.bf16.msra.mxu0 %v1697_v33 }
  0xed   : > { %v1559_v40 = vpop.f32.mrf.mxu0 }
  0xee   : > { %v1956_v44 = vadd.f32 %v1559_v40, %v1424_v41 }
  0xef   : > { %v488_v42 = vpop.f32.mrf.mxu0 }
  0xf0   : > { %v1954_v43 = vadd.f32 %v1424_v41, %v488_v42  ;;  %v501_v46 = vsel %vm497_vm2, %v1956_v44, -inf }
  0xf2   : > { %v498_v45 = vsel %vm497_vm2, %v1954_v43, -inf }
  0xf3   : > { %499 = vmax.xlane.f32.xlu0 %v498_v45  ;;  %v2108_v34 = vpop.f32.mrf.mxu1 }
  0xf5   : > { %v2110_v35 = vpop.f32.mrf.mxu1 }
  0xf7   : > { %502 = vmax.xlane.f32.xlu0 %v501_v46  ;;  %v2112_v36 = vpop.f32.mrf.mxu1 }
  0xf9   : > { %v2114_v37 = vpop.f32.mrf.mxu1 }
  0xfb   : > { %v914_v38 = vpop.f32.mrf.mxu1 }
  0xfd   : > { %v1566_v39 = vpop.f32.mrf.mxu1 }
  0xff   : > { %v917_v40 = vpop.f32.mrf.mxu1 }
 0x100   : > { %v930_v41 = vpack.c.bf16 %v917_v40, %v914_v38 }
 0x101   : > { %v1567_v42 = vpop.f32.mrf.mxu1 }
 0x102   : > { %1199 = vmatmul.mubr.bf16.vlgmr.msra.gmra.mxu0 %v930_v41  ;;  %1156 = vmatmul.mubr.bf16.vlgmr.msra.gmra.mxu1 %v930_v41 }
 0x10e   : > { %v792_v4 = vpop.f32.mrf.mxu0 }
 0x110   : > { %v794_v7 = vpop.f32.mrf.mxu0 }
 0x112   : > { %v796_v9 = vpop.f32.mrf.mxu0 }
 0x17c   : > { %v500_v45 = vpop.xlane.xlu0 %499 }
 0x17d   : > { %v504_v46 = vsub.f32 %v1954_v43, %v500_v45 }
 0x17f   : > { %v506_v47 = vmul.f32 1.442695, %v504_v46 }
 0x180   : > { %v503_v48 = vpop.xlane.xlu0 %502 }
 0x181   : > { %1712 = vpow2.f32 %v506_v47  ;;  %v505_v49 = vsub.f32 %v1956_v44, %v503_v48 }
 0x183   : > { %v508_v50 = vmul.f32 1.442695, %v505_v49 }
 0x185   : > { %1714 = vpow2.f32 %v508_v50 }
 0x18e   : > { %v1713_v51 = vpop.eup %1712 }
 0x18f   : > { %v510_v52 = vsel %vm497_vm2, %v1713_v51, 0.0 }
 0x190   : > { %511 = vadd.xlane.f32.xlu1 %v510_v52 }
 0x192   : > { %v1715_v53 = vpop.eup %1714 }
 0x193   : > { %v513_v54 = vsel %vm497_vm2, %v1715_v53, 0.0 }
 0x194   : > { %514 = vadd.xlane.f32.xlu1 %v513_v54 }
 0x1c2   : > { %v1157_v11 = vpop.f32.mrf.mxu1 }
 0x1c4   : > { %v1159_v13 = vpop.f32.mrf.mxu1 }
 0x1c6   : > { %v1161_v18 = vpop.f32.mrf.mxu1 }
 0x1c8   : > { %v1163_v20 = vpop.f32.mrf.mxu1 }
 0x219   : > { %v512_v56 = vpop.xlane.xlu1 %511 }
 0x21a   : > { %1716 = vrcp.f32 %v512_v56 }
 0x21d   : > { %v515_v43 = vpop.xlane.xlu1 %514 }
 0x21e   : > { %1718 = vrcp.f32 %v515_v43 }
 0x227   : > { %v1717_v57 = vpop.eup %1716 }
 0x228   : > { %v518_v58 = vmul.f32 %v1717_v57, %v1713_v51 }
 0x22a   : > { %520 = vst.msk [vmem:[#allocation3] sm:$0xff] %vm497_vm2, %v518_v58 }
 0x22b   : > { %v1719_v44 = vpop.eup %1718 }
 0x22c   : > { %v519_v59 = vmul.f32 %v1719_v44, %v1715_v53 }
 0x22e   : > { %830 = vperm.xlu0 %1600, %v519_v59   ;;  %521 = vst.msk [vmem:[#allocation3 + $0x8] sm:$0xff] %vm497_vm2, %v519_v59  ;;  %808 = vperm.xlu1 %1598, %v519_v59  }
 0x231   : > { %v1209_v63 = vld [vmem:[#allocation3] sm:$0xff] }
 0x232   : > { %1602 = vset.pattern.permute.xlu0 %v1744_v23  ;;  %1599 = vset.pattern.permute.xlu1 %v1748_v60 }
 0x233   : > { %803 = vperm.xlu0 %1602, %v518_v58   ;;  %818 = vperm.xlu1 %1599, %v519_v59  }
 0x235   : > { %v1210_v62 = vld [vmem:[#allocation3 + $0x8] sm:$0xff] }
 0x237   : > { %1605 = vset.pattern.permute.xlu0 %v1749_v61  ;;  %1601 = vset.pattern.permute.xlu1 %v1749_v61 }
 0x238   : > { %838 = vperm.xlu0 %1605, %v518_v58   ;;  %842 = vperm.xlu1 %1601, %v519_v59  }
 0x23c   : > { %1603 = vset.pattern.permute.xlu1 %v1748_v60  ;;  %1252 = vperm.xlu0 %1605, %v1210_v62  }
 0x23d   : > { %814 = vperm.xlu1 %1603, %v518_v58  }
 0x241   : > { %1604 = vset.pattern.permute.xlu1 %v1747_v55 }
 0x242   : > { %826 = vperm.xlu1 %1604, %v518_v58  }
 0x246   : > { %1606 = vset.pattern.permute.xlu1 %v1744_v23 }
 0x247   : > { %1218 = vperm.xlu1 %1606, %v1210_v62  }
 0x24b   : > { %1607 = vset.pattern.permute.xlu1 %v1748_v60 }
 0x24c   : > { %1228 = vperm.xlu1 %1607, %v1210_v62  }
 0x250   : > { %1608 = vset.pattern.permute.xlu1 %v1747_v55 }
 0x251   : > { %1240 = vperm.xlu1 %1608, %v1210_v62  }
 0x255   : > { %1609 = vset.pattern.permute.xlu1 %v1744_v23  ;;  %v798_v23 = vpop.f32.mrf.mxu0 }
 0x256   : > { %1213 = vperm.xlu1 %1609, %v1209_v63  }
 0x257   : > { %v1200_v14 = vpop.f32.mrf.mxu0 }
 0x259   : > { %v1202_v19 = vpop.f32.mrf.mxu0 }
 0x25a   : > { %1610 = vset.pattern.permute.xlu1 %v1748_v60 }
 0x25b   : > { %1224 = vperm.xlu1 %1610, %v1209_v63   ;;  %v1204_v27 = vpop.f32.mrf.mxu0 }
 0x25d   : > { %v1206_v39 = vpop.f32.mrf.mxu0 }
 0x25f   : > { %1611 = vset.pattern.permute.xlu1 %v1747_v55 }
 0x260   : > { %1236 = vperm.xlu1 %1611, %v1209_v63  }
 0x264   : > { %1612 = vset.pattern.permute.xlu1 %v1749_v61 }
 0x265   : > { %1248 = vperm.xlu1 %1612, %v1209_v63  }
 0x2a9   : > { %v809_v0 = vpop.permute.xlu1 %808  ;;  %v831_v10 = vpop.permute.xlu0 %830 }
 0x2aa   : > { %v812_v26 = vmul.f32 %v809_v0, %v2112_v36  ;;  %v834_v33 = vmul.f32 %v831_v10, %v796_v9 }
 0x2ae   : > { %v819_v1 = vpop.permute.xlu1 %818  ;;  %v804_v15 = vpop.permute.xlu0 %803 }
 0x2af   : > { %v822_v22 = vmul.f32 %v819_v1, %v2114_v37  ;;  %v811_v42 = vmul.f32 %v804_v15, %v2108_v34 }
 0x2b1   : > { %v824_v30 = vadd.f32 %v822_v22, %v812_v26 }
 0x2b3   : > { %v843_v2 = vpop.permute.xlu1 %842  ;;  %v839_v24 = vpop.permute.xlu0 %838  ;;  %v836_v45 = vadd.f32 %v834_v33, %v824_v30 }
 0x2b4   : > { %v846_v37 = vmul.f32 %v843_v2, %v798_v23 }
 0x2b6   : > { %v848_v53 = vadd.f32 %v846_v37, %v836_v45 }
 0x2b7   : > { %v1253_v38 = vpop.permute.xlu0 %1252 }
 0x2b8   : > { %v815_v3 = vpop.permute.xlu1 %814  ;;  %v1256_v46 = vmul.f32 %v1253_v38, %v1206_v39 }
 0x2b9   : > { %v821_v40 = vmul.f32 %v815_v3, %v2110_v35  ;;  %v845_v35 = vmul.f32 %v839_v24, %v794_v7 }
 0x2bb   : > { %v823_v49 = vadd.f32 %v821_v40, %v811_v42 }
 0x2bd   : > { %v827_v5 = vpop.permute.xlu1 %826 }
 0x2be   : > { %v833_v47 = vmul.f32 %v827_v5, %v792_v4 }
 0x2c0   : > { %v835_v54 = vadd.f32 %v833_v47, %v823_v49 }
 0x2c2   : > { %v1219_v8 = vpop.permute.xlu1 %1218  ;;  %v847_v58 = vadd.f32 %v845_v35, %v835_v54 }
 0x2c3   : > { %v1222_v28 = vmul.f32 %v1219_v8, %v1161_v18 }
 0x2c7   : > { %v1229_v12 = vpop.permute.xlu1 %1228 }
 0x2c8   : > { %v1232_v25 = vmul.f32 %v1229_v12, %v1163_v20 }
 0x2ca   : > { %v1234_v32 = vadd.f32 %v1232_v25, %v1222_v28 }
 0x2cc   : > { %v1241_v16 = vpop.permute.xlu1 %1240 }
 0x2cd   : > { %v1244_v29 = vmul.f32 %v1241_v16, %v1204_v27 }
 0x2cf   : > { %v1246_v41 = vadd.f32 %v1244_v29, %v1234_v32 }
 0x2d1   : > { %v1214_v21 = vpop.permute.xlu1 %1213  ;;  %v1258_v50 = vadd.f32 %v1256_v46, %v1246_v41 }
 0x2d2   : > { %v1221_v51 = vmul.f32 %v1214_v21, %v1157_v11 }
 0x2d3   : > { %v1262_v43 = vadd.f32 %v1258_v50, %v848_v53 }
 0x2d5   : > { %v1266_v59 = vadd.f32 %v1262_v43, %v1884_v17 }
 0x2d6   : > { %v1225_v31 = vpop.permute.xlu1 %1224 }
 0x2d7   : > { %v1231_v48 = vmul.f32 %v1225_v31, %v1159_v13  ;;  %v1268_v62 = vmax.f32 %v1266_v59, 0.0 }
 0x2d9   : > { %v1233_v55 = vadd.f32 %v1231_v48, %v1221_v51  ;;  %1270 = vst [vmem:[%s382_s11 + $0x8] sm:$0xff] %v1268_v62 }
 0x2db   : > { %v1237_v36 = vpop.permute.xlu1 %1236 }
 0x2dc   : > { %v1243_v52 = vmul.f32 %v1237_v36, %v1200_v14 }
 0x2de   : > { %v1245_v57 = vadd.f32 %v1243_v52, %v1233_v55 }
 0x2e0   : > { %v1249_v56 = vpop.permute.xlu1 %1248 }
 0x2e1   : > { %v1255_v34 = vmul.f32 %v1249_v56, %v1202_v19 }
 0x2e3   : > { %v1257_v44 = vadd.f32 %v1255_v34, %v1245_v57 }
 0x2e5   : > { %v1261_v60 = vadd.f32 %v1257_v44, %v847_v58 }
 0x2e7   : > { %v1265_v61 = vadd.f32 %v1261_v60, %v1850_v6 }
 0x2e9   : > { %v1267_v63 = vmax.f32 %v1265_v61, 0.0 }
 0x2eb   : > { %1269 = vst [vmem:[%s382_s11] sm:$0xff] %v1267_v63  ;;  %v1502_v0 = vpack.c.bf16 %v1268_v62, %v1267_v63 }
 0x2ed   : > { %1503 = vst [vmem:[%s388_s15] sm:$0xff] %v1502_v0  }
 0x2ee PF: > { %s19_s29 = sadd.s32 1, %s1742_s29   ;;  %s2159_s27 = smov %s1738_s28 }
 0x2ef   : > { %p16_p5 = scmp.ge.s32.totalorder %s19_s29, 4   ;;  %s2160_s28 = smov %s2162_s30 }
 0x2f1   :  { %18 = sbr.rel (!%p16_p5) target bundleno = 2 (0x2), region = 104 }

</bundles_post_ra>
